<compile_context>
chip_gen: v7x
topology: tpu7x:2x2x1
jax: 0.10.0
libtpu: 0.0.40
codegen_flags: <defaults>
</compile_context>

<pallas_src>
import functools

import jax
import jax.numpy as jnp
import numpy as np
from jax import lax
from jax.experimental import pallas as pl
from jax.experimental.pallas import tpu as pltpu


def _sigmoid(v):
    # Stable sigmoid on the EUP: sigmoid(x) = (1 + tanh(x/2)) / 2.
    return 0.5 * jnp.tanh(0.5 * v) + 0.5


def _gcsca_kernel(x_ref, w_fc_ref, w_sp_ref, o_ref, *, H, W):
    # x_ref:    (1, C, H*W) VMEM, lane-dense
    # w_fc_ref: (C, 1)      VMEM   (1x1 conv weight, C -> 1)
    # w_sp_ref: (50,)       SMEM   (5x5 conv weight, flattened (2, 5, 5))
    # o_ref:    (1, C, H*W) VMEM
    HW = H * W
    x = x_ref[0].astype(jnp.float32)                       # (C, HW)

    # ---- channel attention: global avg pool + 1x1 conv + sigmoid ----
    ch_avg = jnp.mean(x, axis=1, keepdims=True)            # (C, 1) one lane reduce
    logit = jnp.sum(w_fc_ref[...] * ch_avg)                # scalar
    att_c = _sigmoid(logit)                                # scalar
    x_c = x * att_c                                        # (C, HW)

    # ---- spatial descriptors: channel-wise max and mean (lane-dense) ----
    mx = jnp.max(x_c, axis=0, keepdims=True)               # (1, HW)
    mn = jnp.mean(x_c, axis=0, keepdims=True)              # (1, HW)

    # ---- 5x5 conv (2 -> 1), padding=2, no bias, on flattened maps ----
    # buf: (2, 2*HW); data in lanes [0, HW), zeros in [HW, 2*HW).  Shifting the
    # flat index by (kh-2)*W + (kw-2) lands out-of-range rows in the zero tail
    # (bottom) or, via wraparound, in the zero tail again (top).  Cross-row
    # column bleed is removed by a per-kw lane mask.
    buf = jnp.concatenate(
        [jnp.concatenate([mx, mn], axis=0),
         jnp.zeros((2, HW), jnp.float32)], axis=1)         # (2, 2*HW)

    col = lax.broadcasted_iota(jnp.int32, (1, HW), 1) % W  # w coordinate
    acc = jnp.zeros((1, HW), jnp.float32)
    for kw in range(5):
        lo = max(0, 2 - kw)
        hi = min(W, W + 2 - kw)
        valid = (col >= lo) & (col < hi)                   # (1, HW) bool
        tmp = jnp.zeros((1, HW), jnp.float32)
        for kh in range(5):
            s = (kh - 2) * W + (kw - 2)
            shift = (-s) % (2 * HW)                        # static, positive
            shifted = pltpu.roll(buf, shift, axis=1) if shift else buf
            win = shifted[:, :HW]                          # (2, HW) aligned slice
            w_mx = w_sp_ref[kh * 5 + kw]                   # SMEM scalar (c = 0)
            w_mn = w_sp_ref[25 + kh * 5 + kw]              # SMEM scalar (c = 1)
            tmp = tmp + w_mx * win[0:1, :] + w_mn * win[1:2, :]
        acc = acc + jnp.where(valid, tmp, 0.0)

    att_s = _sigmoid(acc)                                  # (1, HW)
    o_ref[0] = (x_c * att_s).astype(o_ref.dtype)           # (C, HW) lane-dense store


def gcsca_light(x, w_fc, w_sp):
    """x: (B, C, H, W); w_fc: (1, C, 1, 1) (C -> 1 fc); w_sp: (1, 2, 5, 5)."""
    B, C, H, W = x.shape
    HW = H * W
    # Broadcast `x * channel_att` in the PyTorch module is only valid when the
    # fc output has a single channel (in_channels == reduction).
    assert w_fc.shape == (1, C, 1, 1), "fc must map C -> 1 (C == reduction)"
    assert w_sp.shape == (1, 2, 5, 5)

    x_flat = x.reshape(B, C, HW)
    w_fc_k = w_fc.reshape(C, 1).astype(jnp.float32)        # (C, 1)
    w_sp_k = w_sp.reshape(-1).astype(jnp.float32)          # (50,)

    out_flat = pl.pallas_call(
        functools.partial(_gcsca_kernel, H=H, W=W),
        out_shape=jax.ShapeDtypeStruct((B, C, HW), x.dtype),
        grid=(B,),
        in_specs=[
            pl.BlockSpec((1, C, HW), lambda b: (b, 0, 0)),
            pl.BlockSpec((C, 1), lambda b: (0, 0)),
            pl.BlockSpec(memory_space=pltpu.MemorySpace.SMEM),
        ],
        out_specs=pl.BlockSpec((1, C, HW), lambda b: (b, 0, 0)),
        compiler_params=pltpu.CompilerParams(
            dimension_semantics=("parallel",)),
    )(x_flat, w_fc_k, w_sp_k)
    return out_flat.reshape(B, C, H, W)


def gcsca_light_ref(x, w_fc, w_sp):
    """Pure-JAX reference matching the PyTorch forward."""
    B, C, H, W = x.shape
    avg = jnp.mean(x, axis=(2, 3), keepdims=True)                  # (B, C, 1, 1)
    logit = jnp.sum(avg[:, :, 0, 0] * w_fc.reshape(1, C), axis=1)  # (B,)
    att_c = jax.nn.sigmoid(logit)[:, None, None, None]             # (B, 1, 1, 1)
    x_c = x * att_c
    mx = jnp.max(x_c, axis=1, keepdims=True)
    mn = jnp.mean(x_c, axis=1, keepdims=True)
    cat = jnp.concatenate([mx, mn], axis=1)                        # (B, 2, H, W)
    sp = lax.conv_general_dilated(
        cat, w_sp, window_strides=(1, 1), padding="SAME",
        dimension_numbers=("NCHW", "OIHW", "NCHW"))
    att_s = jax.nn.sigmoid(sp)
    return x_c * att_s


if __name__ == "__main__":
    # in_channels = 32, reduction = 32  ->  fc output channels = 1
    B, C, H, W = 2, 32, 16, 16
    key = jax.random.PRNGKey(0)
    k_x, k_fc, k_sp = jax.random.split(key, 3)

    x = jax.random.normal(k_x, (B, C, H, W), dtype=jnp.float32)
    # Deterministic synthetic weights (shapes from the module __init__).
    w_fc = jax.random.normal(k_fc, (1, C, 1, 1), dtype=jnp.float32) * 0.1
    w_sp = jax.random.normal(k_sp, (1, 2, 5, 5), dtype=jnp.float32) * 0.1

    out = gcsca_light(x, w_fc, w_sp)
    out = jax.block_until_ready(out)

    ref = jax.block_until_ready(gcsca_light_ref(x, w_fc, w_sp))
    np.testing.assert_allclose(np.asarray(out), np.asarray(ref),
                               rtol=1e-5, atol=1e-5)
    print("KERNEL_OK")
</pallas_src>

<mosaic_0001>
module attributes {stable_mosaic.version = 11 : i64} {
  func.func @_gcsca_kernel(%arg0: i32, %arg1: memref<1x32x256xf32, #tpu.memory_space<vmem>>, %arg2: memref<32x1xf32, #tpu.memory_space<vmem>>, %arg3: memref<50xf32, #tpu.memory_space<smem>>, %arg4: memref<1x32x256xf32, #tpu.memory_space<vmem>>) attributes {dimension_semantics = [#tpu.dimension_semantics<parallel>], iteration_bounds = array<i64: 2>, scalar_prefetch = 0 : i64, scratch_operands = 0 : i64, tpu.core_type = #tpu.core_type<tc>, window_params = [{transform_indices = @transform_0, window_bounds = array<i64: 1, 32, 256>}, {pipeline_mode = #tpu.pipeline_mode<synchronous>, transform_indices = @transform_1, window_bounds = array<i64: 32, 1>}, {transform_indices = @transform_2, window_bounds = array<i64: 50>}, {transform_indices = @transform_3, window_bounds = array<i64: 1, 32, 256>}]} {
    %c0 = arith.constant 0 : index
    %c0_0 = arith.constant 0 : index
    %c0_1 = arith.constant 0 : index
    %0 = vector.load %arg1[%c0, %c0_0, %c0_1] : memref<1x32x256xf32, #tpu.memory_space<vmem>>, vector<1x32x256xf32>
    %1 = vector.shape_cast %0 : vector<1x32x256xf32> to vector<32x256xf32>
    %cst = arith.constant dense<0.000000e+00> : vector<32xf32>
    %2 = vector.multi_reduction <add>, %1, %cst [1] : vector<32x256xf32> to vector<32xf32>
    %3 = vector.shape_cast %2 : vector<32xf32> to vector<32x1xf32>
    %cst_2 = arith.constant 2.560000e+02 : f32
    %4 = vector.broadcast %cst_2 : f32 to vector<32x1xf32>
    %5 = arith.divf %3, %4 : vector<32x1xf32>
    %c0_3 = arith.constant 0 : index
    %c0_4 = arith.constant 0 : index
    %6 = vector.load %arg2[%c0_3, %c0_4] : memref<32x1xf32, #tpu.memory_space<vmem>>, vector<32x1xf32>
    %7 = arith.mulf %6, %5 : vector<32x1xf32>
    %8 = vector.shape_cast %7 : vector<32x1xf32> to vector<1x32x1xf32>
    %cst_5 = arith.constant dense<0.000000e+00> : vector<1xf32>
    %9 = vector.multi_reduction <add>, %8, %cst_5 [1, 2] : vector<1x32x1xf32> to vector<1xf32>
    %10 = vector.shape_cast %9 : vector<1xf32> to vector<1x1x1xf32>
    %11 = vector.extract %10[0, 0, 0] : f32 from vector<1x1x1xf32>
    %cst_6 = arith.constant 5.000000e-01 : f32
    %12 = arith.mulf %cst_6, %11 : f32
    %13 = math.tanh %12 : f32
    %cst_7 = arith.constant 5.000000e-01 : f32
    %14 = arith.mulf %cst_7, %13 : f32
    %cst_8 = arith.constant 5.000000e-01 : f32
    %15 = arith.addf %14, %cst_8 : f32
    %16 = vector.broadcast %15 : f32 to vector<32x256xf32>
    %17 = arith.mulf %1, %16 : vector<32x256xf32>
    %cst_9 = arith.constant dense<0xFF800000> : vector<256xf32>
    %18 = vector.multi_reduction <maximumf>, %17, %cst_9 [0] : vector<32x256xf32> to vector<256xf32>
    %19 = vector.shape_cast %18 : vector<256xf32> to vector<1x256xf32>
    %cst_10 = arith.constant dense<0.000000e+00> : vector<256xf32>
    %20 = vector.multi_reduction <add>, %17, %cst_10 [0] : vector<32x256xf32> to vector<256xf32>
    %21 = vector.shape_cast %20 : vector<256xf32> to vector<1x256xf32>
    %cst_11 = arith.constant 3.200000e+01 : f32
    %22 = vector.broadcast %cst_11 : f32 to vector<1x256xf32>
    %23 = arith.divf %21, %22 : vector<1x256xf32>
    %24 = tpu.concatenate %19, %23 in 0 : vector<1x256xf32>, vector<1x256xf32> -> vector<2x256xf32>
    %cst_12 = arith.constant 0.000000e+00 : f32
    %25 = vector.broadcast %cst_12 : f32 to vector<2x256xf32>
    %26 = tpu.concatenate %24, %25 in 1 : vector<2x256xf32>, vector<2x256xf32> -> vector<2x512xf32>
    %27 = tpu.iota {dimensions = array<i32: 1>} : vector<1x256xi32>
    %c16_i32 = arith.constant 16 : i32
    %c0_i32 = arith.constant 0 : i32
    %28 = arith.cmpi eq, %c16_i32, %c0_i32 : i32
    %c1_i32 = arith.constant 1 : i32
    %29 = arith.select %28, %c1_i32, %c16_i32 : i32
    %30 = vector.broadcast %29 : i32 to vector<1x256xi32>
    %31 = arith.remsi %27, %30 : vector<1x256xi32>
    %c0_i32_13 = arith.constant 0 : i32
    %32 = vector.broadcast %c0_i32_13 : i32 to vector<1x256xi32>
    %33 = arith.cmpi ne, %31, %32 : vector<1x256xi32>
    %c0_i32_14 = arith.constant 0 : i32
    %34 = vector.broadcast %c0_i32_14 : i32 to vector<1x256xi32>
    %35 = arith.cmpi slt, %31, %34 : vector<1x256xi32>
    %c0_i32_15 = arith.constant 0 : i32
    %36 = arith.cmpi slt, %29, %c0_i32_15 : i32
    %37 = vector.broadcast %36 : i1 to vector<1x256xi1>
    %38 = vector.broadcast %37 : vector<1x256xi1> to vector<1x256xi1>
    %39 = arith.xori %35, %38 : vector<1x256xi1>
    %40 = arith.andi %39, %33 : vector<1x256xi1>
    %41 = vector.broadcast %29 : i32 to vector<1x256xi32>
    %42 = arith.addi %31, %41 : vector<1x256xi32>
    %43 = arith.select %40, %42, %31 : vector<1x256xi1>, vector<1x256xi32>
    %cst_16 = arith.constant 0.000000e+00 : f32
    %44 = vector.broadcast %cst_16 : f32 to vector<1x256xf32>
    %c2_i32 = arith.constant 2 : i32
    %45 = vector.broadcast %c2_i32 : i32 to vector<1x256xi32>
    %46 = arith.cmpi sge, %43, %45 : vector<1x256xi32>
    %c16_i32_17 = arith.constant 16 : i32
    %47 = vector.broadcast %c16_i32_17 : i32 to vector<1x256xi32>
    %48 = arith.cmpi slt, %43, %47 : vector<1x256xi32>
    %49 = arith.andi %46, %48 : vector<1x256xi1>
    %cst_18 = arith.constant 0.000000e+00 : f32
    %50 = vector.broadcast %cst_18 : f32 to vector<1x256xf32>
    %c34_i32 = arith.constant 34 : i32
    %51 = tpu.dynamic_rotate %26 by %c34_i32 dim 1 : vector<2x512xf32>, i32 -> vector<2x512xf32>
    %52 = vector.extract_strided_slice %51 {offsets = [0, 0], sizes = [2, 256], strides = [1, 1]} : vector<2x512xf32> to vector<2x256xf32>
    %c0_19 = arith.constant 0 : index
    %53 = memref.load %arg3[%c0_19] : memref<50xf32, #tpu.memory_space<smem>>
    %c25 = arith.constant 25 : index
    %54 = memref.load %arg3[%c25] : memref<50xf32, #tpu.memory_space<smem>>
    %55 = vector.extract_strided_slice %52 {offsets = [0, 0], sizes = [1, 256], strides = [1, 1]} : vector<2x256xf32> to vector<1x256xf32>
    %56 = vector.broadcast %53 : f32 to vector<1x256xf32>
    %57 = arith.mulf %56, %55 : vector<1x256xf32>
    %58 = arith.addf %50, %57 : vector<1x256xf32>
    %59 = vector.extract_strided_slice %52 {offsets = [1, 0], sizes = [1, 256], strides = [1, 1]} : vector<2x256xf32> to vector<1x256xf32>
    %60 = vector.broadcast %54 : f32 to vector<1x256xf32>
    %61 = arith.mulf %60, %59 : vector<1x256xf32>
    %62 = arith.addf %58, %61 : vector<1x256xf32>
    %c18_i32 = arith.constant 18 : i32
    %63 = tpu.dynamic_rotate %26 by %c18_i32 dim 1 : vector<2x512xf32>, i32 -> vector<2x512xf32>
    %64 = vector.extract_strided_slice %63 {offsets = [0, 0], sizes = [2, 256], strides = [1, 1]} : vector<2x512xf32> to vector<2x256xf32>
    %c5 = arith.constant 5 : index
    %65 = memref.load %arg3[%c5] : memref<50xf32, #tpu.memory_space<smem>>
    %c30 = arith.constant 30 : index
    %66 = memref.load %arg3[%c30] : memref<50xf32, #tpu.memory_space<smem>>
    %67 = vector.extract_strided_slice %64 {offsets = [0, 0], sizes = [1, 256], strides = [1, 1]} : vector<2x256xf32> to vector<1x256xf32>
    %68 = vector.broadcast %65 : f32 to vector<1x256xf32>
    %69 = arith.mulf %68, %67 : vector<1x256xf32>
    %70 = arith.addf %62, %69 : vector<1x256xf32>
    %71 = vector.extract_strided_slice %64 {offsets = [1, 0], sizes = [1, 256], strides = [1, 1]} : vector<2x256xf32> to vector<1x256xf32>
    %72 = vector.broadcast %66 : f32 to vector<1x256xf32>
    %73 = arith.mulf %72, %71 : vector<1x256xf32>
    %74 = arith.addf %70, %73 : vector<1x256xf32>
    %c2_i32_20 = arith.constant 2 : i32
    %75 = tpu.dynamic_rotate %26 by %c2_i32_20 dim 1 : vector<2x512xf32>, i32 -> vector<2x512xf32>
    %76 = vector.extract_strided_slice %75 {offsets = [0, 0], sizes = [2, 256], strides = [1, 1]} : vector<2x512xf32> to vector<2x256xf32>
    %c10 = arith.constant 10 : index
    %77 = memref.load %arg3[%c10] : memref<50xf32, #tpu.memory_space<smem>>
    %c35 = arith.constant 35 : index
    %78 = memref.load %arg3[%c35] : memref<50xf32, #tpu.memory_space<smem>>
    %79 = vector.extract_strided_slice %76 {offsets = [0, 0], sizes = [1, 256], strides = [1, 1]} : vector<2x256xf32> to vector<1x256xf32>
    %80 = vector.broadcast %77 : f32 to vector<1x256xf32>
    %81 = arith.mulf %80, %79 : vector<1x256xf32>
    %82 = arith.addf %74, %81 : vector<1x256xf32>
    %83 = vector.extract_strided_slice %76 {offsets = [1, 0], sizes = [1, 256], strides = [1, 1]} : vector<2x256xf32> to vector<1x256xf32>
    %84 = vector.broadcast %78 : f32 to vector<1x256xf32>
    %85 = arith.mulf %84, %83 : vector<1x256xf32>
    %86 = arith.addf %82, %85 : vector<1x256xf32>
    %c498_i32 = arith.constant 498 : i32
    %87 = tpu.dynamic_rotate %26 by %c498_i32 dim 1 : vector<2x512xf32>, i32 -> vector<2x512xf32>
    %88 = vector.extract_strided_slice %87 {offsets = [0, 0], sizes = [2, 256], strides = [1, 1]} : vector<2x512xf32> to vector<2x256xf32>
    %c15 = arith.constant 15 : index
    %89 = memref.load %arg3[%c15] : memref<50xf32, #tpu.memory_space<smem>>
    %c40 = arith.constant 40 : index
    %90 = memref.load %arg3[%c40] : memref<50xf32, #tpu.memory_space<smem>>
    %91 = vector.extract_strided_slice %88 {offsets = [0, 0], sizes = [1, 256], strides = [1, 1]} : vector<2x256xf32> to vector<1x256xf32>
    %92 = vector.broadcast %89 : f32 to vector<1x256xf32>
    %93 = arith.mulf %92, %91 : vector<1x256xf32>
    %94 = arith.addf %86, %93 : vector<1x256xf32>
    %95 = vector.extract_strided_slice %88 {offsets = [1, 0], sizes = [1, 256], strides = [1, 1]} : vector<2x256xf32> to vector<1x256xf32>
    %96 = vector.broadcast %90 : f32 to vector<1x256xf32>
    %97 = arith.mulf %96, %95 : vector<1x256xf32>
    %98 = arith.addf %94, %97 : vector<1x256xf32>
    %c482_i32 = arith.constant 482 : i32
    %99 = tpu.dynamic_rotate %26 by %c482_i32 dim 1 : vector<2x512xf32>, i32 -> vector<2x512xf32>
    %100 = vector.extract_strided_slice %99 {offsets = [0, 0], sizes = [2, 256], strides = [1, 1]} : vector<2x512xf32> to vector<2x256xf32>
    %c20 = arith.constant 20 : index
    %101 = memref.load %arg3[%c20] : memref<50xf32, #tpu.memory_space<smem>>
    %c45 = arith.constant 45 : index
    %102 = memref.load %arg3[%c45] : memref<50xf32, #tpu.memory_space<smem>>
    %103 = vector.extract_strided_slice %100 {offsets = [0, 0], sizes = [1, 256], strides = [1, 1]} : vector<2x256xf32> to vector<1x256xf32>
    %104 = vector.broadcast %101 : f32 to vector<1x256xf32>
    %105 = arith.mulf %104, %103 : vector<1x256xf32>
    %106 = arith.addf %98, %105 : vector<1x256xf32>
    %107 = vector.extract_strided_slice %100 {offsets = [1, 0], sizes = [1, 256], strides = [1, 1]} : vector<2x256xf32> to vector<1x256xf32>
    %108 = vector.broadcast %102 : f32 to vector<1x256xf32>
    %109 = arith.mulf %108, %107 : vector<1x256xf32>
    %110 = arith.addf %106, %109 : vector<1x256xf32>
    %cst_21 = arith.constant 0.000000e+00 : f32
    %111 = vector.broadcast %cst_21 : f32 to vector<1x256xf32>
    %112 = arith.select %49, %110, %111 : vector<1x256xi1>, vector<1x256xf32>
    %113 = arith.addf %44, %112 : vector<1x256xf32>
    %c1_i32_22 = arith.constant 1 : i32
    %114 = vector.broadcast %c1_i32_22 : i32 to vector<1x256xi32>
    %115 = arith.cmpi sge, %43, %114 : vector<1x256xi32>
    %c16_i32_23 = arith.constant 16 : i32
    %116 = vector.broadcast %c16_i32_23 : i32 to vector<1x256xi32>
    %117 = arith.cmpi slt, %43, %116 : vector<1x256xi32>
    %118 = arith.andi %115, %117 : vector<1x256xi1>
    %cst_24 = arith.constant 0.000000e+00 : f32
    %119 = vector.broadcast %cst_24 : f32 to vector<1x256xf32>
    %c33_i32 = arith.constant 33 : i32
    %120 = tpu.dynamic_rotate %26 by %c33_i32 dim 1 : vector<2x512xf32>, i32 -> vector<2x512xf32>
    %121 = vector.extract_strided_slice %120 {offsets = [0, 0], sizes = [2, 256], strides = [1, 1]} : vector<2x512xf32> to vector<2x256xf32>
    %c1 = arith.constant 1 : index
    %122 = memref.load %arg3[%c1] : memref<50xf32, #tpu.memory_space<smem>>
    %c26 = arith.constant 26 : index
    %123 = memref.load %arg3[%c26] : memref<50xf32, #tpu.memory_space<smem>>
    %124 = vector.extract_strided_slice %121 {offsets = [0, 0], sizes = [1, 256], strides = [1, 1]} : vector<2x256xf32> to vector<1x256xf32>
    %125 = vector.broadcast %122 : f32 to vector<1x256xf32>
    %126 = arith.mulf %125, %124 : vector<1x256xf32>
    %127 = arith.addf %119, %126 : vector<1x256xf32>
    %128 = vector.extract_strided_slice %121 {offsets = [1, 0], sizes = [1, 256], strides = [1, 1]} : vector<2x256xf32> to vector<1x256xf32>
    %129 = vector.broadcast %123 : f32 to vector<1x256xf32>
    %130 = arith.mulf %129, %128 : vector<1x256xf32>
    %131 = arith.addf %127, %130 : vector<1x256xf32>
    %c17_i32 = arith.constant 17 : i32
    %132 = tpu.dynamic_rotate %26 by %c17_i32 dim 1 : vector<2x512xf32>, i32 -> vector<2x512xf32>
    %133 = vector.extract_strided_slice %132 {offsets = [0, 0], sizes = [2, 256], strides = [1, 1]} : vector<2x512xf32> to vector<2x256xf32>
    %c6 = arith.constant 6 : index
    %134 = memref.load %arg3[%c6] : memref<50xf32, #tpu.memory_space<smem>>
    %c31 = arith.constant 31 : index
    %135 = memref.load %arg3[%c31] : memref<50xf32, #tpu.memory_space<smem>>
    %136 = vector.extract_strided_slice %133 {offsets = [0, 0], sizes = [1, 256], strides = [1, 1]} : vector<2x256xf32> to vector<1x256xf32>
    %137 = vector.broadcast %134 : f32 to vector<1x256xf32>
    %138 = arith.mulf %137, %136 : vector<1x256xf32>
    %139 = arith.addf %131, %138 : vector<1x256xf32>
    %140 = vector.extract_strided_slice %133 {offsets = [1, 0], sizes = [1, 256], strides = [1, 1]} : vector<2x256xf32> to vector<1x256xf32>
    %141 = vector.broadcast %135 : f32 to vector<1x256xf32>
    %142 = arith.mulf %141, %140 : vector<1x256xf32>
    %143 = arith.addf %139, %142 : vector<1x256xf32>
    %c1_i32_25 = arith.constant 1 : i32
    %144 = tpu.dynamic_rotate %26 by %c1_i32_25 dim 1 : vector<2x512xf32>, i32 -> vector<2x512xf32>
    %145 = vector.extract_strided_slice %144 {offsets = [0, 0], sizes = [2, 256], strides = [1, 1]} : vector<2x512xf32> to vector<2x256xf32>
    %c11 = arith.constant 11 : index
    %146 = memref.load %arg3[%c11] : memref<50xf32, #tpu.memory_space<smem>>
    %c36 = arith.constant 36 : index
    %147 = memref.load %arg3[%c36] : memref<50xf32, #tpu.memory_space<smem>>
    %148 = vector.extract_strided_slice %145 {offsets = [0, 0], sizes = [1, 256], strides = [1, 1]} : vector<2x256xf32> to vector<1x256xf32>
    %149 = vector.broadcast %146 : f32 to vector<1x256xf32>
    %150 = arith.mulf %149, %148 : vector<1x256xf32>
    %151 = arith.addf %143, %150 : vector<1x256xf32>
    %152 = vector.extract_strided_slice %145 {offsets = [1, 0], sizes = [1, 256], strides = [1, 1]} : vector<2x256xf32> to vector<1x256xf32>
    %153 = vector.broadcast %147 : f32 to vector<1x256xf32>
    %154 = arith.mulf %153, %152 : vector<1x256xf32>
    %155 = arith.addf %151, %154 : vector<1x256xf32>
    %c497_i32 = arith.constant 497 : i32
    %156 = tpu.dynamic_rotate %26 by %c497_i32 dim 1 : vector<2x512xf32>, i32 -> vector<2x512xf32>
    %157 = vector.extract_strided_slice %156 {offsets = [0, 0], sizes = [2, 256], strides = [1, 1]} : vector<2x512xf32> to vector<2x256xf32>
    %c16 = arith.constant 16 : index
    %158 = memref.load %arg3[%c16] : memref<50xf32, #tpu.memory_space<smem>>
    %c41 = arith.constant 41 : index
    %159 = memref.load %arg3[%c41] : memref<50xf32, #tpu.memory_space<smem>>
    %160 = vector.extract_strided_slice %157 {offsets = [0, 0], sizes = [1, 256], strides = [1, 1]} : vector<2x256xf32> to vector<1x256xf32>
    %161 = vector.broadcast %158 : f32 to vector<1x256xf32>
    %162 = arith.mulf %161, %160 : vector<1x256xf32>
    %163 = arith.addf %155, %162 : vector<1x256xf32>
    %164 = vector.extract_strided_slice %157 {offsets = [1, 0], sizes = [1, 256], strides = [1, 1]} : vector<2x256xf32> to vector<1x256xf32>
    %165 = vector.broadcast %159 : f32 to vector<1x256xf32>
    %166 = arith.mulf %165, %164 : vector<1x256xf32>
    %167 = arith.addf %163, %166 : vector<1x256xf32>
    %c481_i32 = arith.constant 481 : i32
    %168 = tpu.dynamic_rotate %26 by %c481_i32 dim 1 : vector<2x512xf32>, i32 -> vector<2x512xf32>
    %169 = vector.extract_strided_slice %168 {offsets = [0, 0], sizes = [2, 256], strides = [1, 1]} : vector<2x512xf32> to vector<2x256xf32>
    %c21 = arith.constant 21 : index
    %170 = memref.load %arg3[%c21] : memref<50xf32, #tpu.memory_space<smem>>
    %c46 = arith.constant 46 : index
    %171 = memref.load %arg3[%c46] : memref<50xf32, #tpu.memory_space<smem>>
    %172 = vector.extract_strided_slice %169 {offsets = [0, 0], sizes = [1, 256], strides = [1, 1]} : vector<2x256xf32> to vector<1x256xf32>
    %173 = vector.broadcast %170 : f32 to vector<1x256xf32>
    %174 = arith.mulf %173, %172 : vector<1x256xf32>
    %175 = arith.addf %167, %174 : vector<1x256xf32>
    %176 = vector.extract_strided_slice %169 {offsets = [1, 0], sizes = [1, 256], strides = [1, 1]} : vector<2x256xf32> to vector<1x256xf32>
    %177 = vector.broadcast %171 : f32 to vector<1x256xf32>
    %178 = arith.mulf %177, %176 : vector<1x256xf32>
    %179 = arith.addf %175, %178 : vector<1x256xf32>
    %cst_26 = arith.constant 0.000000e+00 : f32
    %180 = vector.broadcast %cst_26 : f32 to vector<1x256xf32>
    %181 = arith.select %118, %179, %180 : vector<1x256xi1>, vector<1x256xf32>
    %182 = arith.addf %113, %181 : vector<1x256xf32>
    %c0_i32_27 = arith.constant 0 : i32
    %183 = vector.broadcast %c0_i32_27 : i32 to vector<1x256xi32>
    %184 = arith.cmpi sge, %43, %183 : vector<1x256xi32>
    %c16_i32_28 = arith.constant 16 : i32
    %185 = vector.broadcast %c16_i32_28 : i32 to vector<1x256xi32>
    %186 = arith.cmpi slt, %43, %185 : vector<1x256xi32>
    %187 = arith.andi %184, %186 : vector<1x256xi1>
    %cst_29 = arith.constant 0.000000e+00 : f32
    %188 = vector.broadcast %cst_29 : f32 to vector<1x256xf32>
    %c32_i32 = arith.constant 32 : i32
    %189 = tpu.dynamic_rotate %26 by %c32_i32 dim 1 : vector<2x512xf32>, i32 -> vector<2x512xf32>
    %190 = vector.extract_strided_slice %189 {offsets = [0, 0], sizes = [2, 256], strides = [1, 1]} : vector<2x512xf32> to vector<2x256xf32>
    %c2 = arith.constant 2 : index
    %191 = memref.load %arg3[%c2] : memref<50xf32, #tpu.memory_space<smem>>
    %c27 = arith.constant 27 : index
    %192 = memref.load %arg3[%c27] : memref<50xf32, #tpu.memory_space<smem>>
    %193 = vector.extract_strided_slice %190 {offsets = [0, 0], sizes = [1, 256], strides = [1, 1]} : vector<2x256xf32> to vector<1x256xf32>
    %194 = vector.broadcast %191 : f32 to vector<1x256xf32>
    %195 = arith.mulf %194, %193 : vector<1x256xf32>
    %196 = arith.addf %188, %195 : vector<1x256xf32>
    %197 = vector.extract_strided_slice %190 {offsets = [1, 0], sizes = [1, 256], strides = [1, 1]} : vector<2x256xf32> to vector<1x256xf32>
    %198 = vector.broadcast %192 : f32 to vector<1x256xf32>
    %199 = arith.mulf %198, %197 : vector<1x256xf32>
    %200 = arith.addf %196, %199 : vector<1x256xf32>
    %c16_i32_30 = arith.constant 16 : i32
    %201 = tpu.dynamic_rotate %26 by %c16_i32_30 dim 1 : vector<2x512xf32>, i32 -> vector<2x512xf32>
    %202 = vector.extract_strided_slice %201 {offsets = [0, 0], sizes = [2, 256], strides = [1, 1]} : vector<2x512xf32> to vector<2x256xf32>
    %c7 = arith.constant 7 : index
    %203 = memref.load %arg3[%c7] : memref<50xf32, #tpu.memory_space<smem>>
    %c32 = arith.constant 32 : index
    %204 = memref.load %arg3[%c32] : memref<50xf32, #tpu.memory_space<smem>>
    %205 = vector.extract_strided_slice %202 {offsets = [0, 0], sizes = [1, 256], strides = [1, 1]} : vector<2x256xf32> to vector<1x256xf32>
    %206 = vector.broadcast %203 : f32 to vector<1x256xf32>
    %207 = arith.mulf %206, %205 : vector<1x256xf32>
    %208 = arith.addf %200, %207 : vector<1x256xf32>
    %209 = vector.extract_strided_slice %202 {offsets = [1, 0], sizes = [1, 256], strides = [1, 1]} : vector<2x256xf32> to vector<1x256xf32>
    %210 = vector.broadcast %204 : f32 to vector<1x256xf32>
    %211 = arith.mulf %210, %209 : vector<1x256xf32>
    %212 = arith.addf %208, %211 : vector<1x256xf32>
    %213 = vector.extract_strided_slice %26 {offsets = [0, 0], sizes = [2, 256], strides = [1, 1]} : vector<2x512xf32> to vector<2x256xf32>
    %c12 = arith.constant 12 : index
    %214 = memref.load %arg3[%c12] : memref<50xf32, #tpu.memory_space<smem>>
    %c37 = arith.constant 37 : index
    %215 = memref.load %arg3[%c37] : memref<50xf32, #tpu.memory_space<smem>>
    %216 = vector.extract_strided_slice %213 {offsets = [0, 0], sizes = [1, 256], strides = [1, 1]} : vector<2x256xf32> to vector<1x256xf32>
    %217 = vector.broadcast %214 : f32 to vector<1x256xf32>
    %218 = arith.mulf %217, %216 : vector<1x256xf32>
    %219 = arith.addf %212, %218 : vector<1x256xf32>
    %220 = vector.extract_strided_slice %213 {offsets = [1, 0], sizes = [1, 256], strides = [1, 1]} : vector<2x256xf32> to vector<1x256xf32>
    %221 = vector.broadcast %215 : f32 to vector<1x256xf32>
    %222 = arith.mulf %221, %220 : vector<1x256xf32>
    %223 = arith.addf %219, %222 : vector<1x256xf32>
    %c496_i32 = arith.constant 496 : i32
    %224 = tpu.dynamic_rotate %26 by %c496_i32 dim 1 : vector<2x512xf32>, i32 -> vector<2x512xf32>
    %225 = vector.extract_strided_slice %224 {offsets = [0, 0], sizes = [2, 256], strides = [1, 1]} : vector<2x512xf32> to vector<2x256xf32>
    %c17 = arith.constant 17 : index
    %226 = memref.load %arg3[%c17] : memref<50xf32, #tpu.memory_space<smem>>
    %c42 = arith.constant 42 : index
    %227 = memref.load %arg3[%c42] : memref<50xf32, #tpu.memory_space<smem>>
    %228 = vector.extract_strided_slice %225 {offsets = [0, 0], sizes = [1, 256], strides = [1, 1]} : vector<2x256xf32> to vector<1x256xf32>
    %229 = vector.broadcast %226 : f32 to vector<1x256xf32>
    %230 = arith.mulf %229, %228 : vector<1x256xf32>
    %231 = arith.addf %223, %230 : vector<1x256xf32>
    %232 = vector.extract_strided_slice %225 {offsets = [1, 0], sizes = [1, 256], strides = [1, 1]} : vector<2x256xf32> to vector<1x256xf32>
    %233 = vector.broadcast %227 : f32 to vector<1x256xf32>
    %234 = arith.mulf %233, %232 : vector<1x256xf32>
    %235 = arith.addf %231, %234 : vector<1x256xf32>
    %c480_i32 = arith.constant 480 : i32
    %236 = tpu.dynamic_rotate %26 by %c480_i32 dim 1 : vector<2x512xf32>, i32 -> vector<2x512xf32>
    %237 = vector.extract_strided_slice %236 {offsets = [0, 0], sizes = [2, 256], strides = [1, 1]} : vector<2x512xf32> to vector<2x256xf32>
    %c22 = arith.constant 22 : index
    %238 = memref.load %arg3[%c22] : memref<50xf32, #tpu.memory_space<smem>>
    %c47 = arith.constant 47 : index
    %239 = memref.load %arg3[%c47] : memref<50xf32, #tpu.memory_space<smem>>
    %240 = vector.extract_strided_slice %237 {offsets = [0, 0], sizes = [1, 256], strides = [1, 1]} : vector<2x256xf32> to vector<1x256xf32>
    %241 = vector.broadcast %238 : f32 to vector<1x256xf32>
    %242 = arith.mulf %241, %240 : vector<1x256xf32>
    %243 = arith.addf %235, %242 : vector<1x256xf32>
    %244 = vector.extract_strided_slice %237 {offsets = [1, 0], sizes = [1, 256], strides = [1, 1]} : vector<2x256xf32> to vector<1x256xf32>
    %245 = vector.broadcast %239 : f32 to vector<1x256xf32>
    %246 = arith.mulf %245, %244 : vector<1x256xf32>
    %247 = arith.addf %243, %246 : vector<1x256xf32>
    %cst_31 = arith.constant 0.000000e+00 : f32
    %248 = vector.broadcast %cst_31 : f32 to vector<1x256xf32>
    %249 = arith.select %187, %247, %248 : vector<1x256xi1>, vector<1x256xf32>
    %250 = arith.addf %182, %249 : vector<1x256xf32>
    %c0_i32_32 = arith.constant 0 : i32
    %251 = vector.broadcast %c0_i32_32 : i32 to vector<1x256xi32>
    %252 = arith.cmpi sge, %43, %251 : vector<1x256xi32>
    %c15_i32 = arith.constant 15 : i32
    %253 = vector.broadcast %c15_i32 : i32 to vector<1x256xi32>
    %254 = arith.cmpi slt, %43, %253 : vector<1x256xi32>
    %255 = arith.andi %252, %254 : vector<1x256xi1>
    %cst_33 = arith.constant 0.000000e+00 : f32
    %256 = vector.broadcast %cst_33 : f32 to vector<1x256xf32>
    %c31_i32 = arith.constant 31 : i32
    %257 = tpu.dynamic_rotate %26 by %c31_i32 dim 1 : vector<2x512xf32>, i32 -> vector<2x512xf32>
    %258 = vector.extract_strided_slice %257 {offsets = [0, 0], sizes = [2, 256], strides = [1, 1]} : vector<2x512xf32> to vector<2x256xf32>
    %c3 = arith.constant 3 : index
    %259 = memref.load %arg3[%c3] : memref<50xf32, #tpu.memory_space<smem>>
    %c28 = arith.constant 28 : index
    %260 = memref.load %arg3[%c28] : memref<50xf32, #tpu.memory_space<smem>>
    %261 = vector.extract_strided_slice %258 {offsets = [0, 0], sizes = [1, 256], strides = [1, 1]} : vector<2x256xf32> to vector<1x256xf32>
    %262 = vector.broadcast %259 : f32 to vector<1x256xf32>
    %263 = arith.mulf %262, %261 : vector<1x256xf32>
    %264 = arith.addf %256, %263 : vector<1x256xf32>
    %265 = vector.extract_strided_slice %258 {offsets = [1, 0], sizes = [1, 256], strides = [1, 1]} : vector<2x256xf32> to vector<1x256xf32>
    %266 = vector.broadcast %260 : f32 to vector<1x256xf32>
    %267 = arith.mulf %266, %265 : vector<1x256xf32>
    %268 = arith.addf %264, %267 : vector<1x256xf32>
    %c15_i32_34 = arith.constant 15 : i32
    %269 = tpu.dynamic_rotate %26 by %c15_i32_34 dim 1 : vector<2x512xf32>, i32 -> vector<2x512xf32>
    %270 = vector.extract_strided_slice %269 {offsets = [0, 0], sizes = [2, 256], strides = [1, 1]} : vector<2x512xf32> to vector<2x256xf32>
    %c8 = arith.constant 8 : index
    %271 = memref.load %arg3[%c8] : memref<50xf32, #tpu.memory_space<smem>>
    %c33 = arith.constant 33 : index
    %272 = memref.load %arg3[%c33] : memref<50xf32, #tpu.memory_space<smem>>
    %273 = vector.extract_strided_slice %270 {offsets = [0, 0], sizes = [1, 256], strides = [1, 1]} : vector<2x256xf32> to vector<1x256xf32>
    %274 = vector.broadcast %271 : f32 to vector<1x256xf32>
    %275 = arith.mulf %274, %273 : vector<1x256xf32>
    %276 = arith.addf %268, %275 : vector<1x256xf32>
    %277 = vector.extract_strided_slice %270 {offsets = [1, 0], sizes = [1, 256], strides = [1, 1]} : vector<2x256xf32> to vector<1x256xf32>
    %278 = vector.broadcast %272 : f32 to vector<1x256xf32>
    %279 = arith.mulf %278, %277 : vector<1x256xf32>
    %280 = arith.addf %276, %279 : vector<1x256xf32>
    %c511_i32 = arith.constant 511 : i32
    %281 = tpu.dynamic_rotate %26 by %c511_i32 dim 1 : vector<2x512xf32>, i32 -> vector<2x512xf32>
    %282 = vector.extract_strided_slice %281 {offsets = [0, 0], sizes = [2, 256], strides = [1, 1]} : vector<2x512xf32> to vector<2x256xf32>
    %c13 = arith.constant 13 : index
    %283 = memref.load %arg3[%c13] : memref<50xf32, #tpu.memory_space<smem>>
    %c38 = arith.constant 38 : index
    %284 = memref.load %arg3[%c38] : memref<50xf32, #tpu.memory_space<smem>>
    %285 = vector.extract_strided_slice %282 {offsets = [0, 0], sizes = [1, 256], strides = [1, 1]} : vector<2x256xf32> to vector<1x256xf32>
    %286 = vector.broadcast %283 : f32 to vector<1x256xf32>
    %287 = arith.mulf %286, %285 : vector<1x256xf32>
    %288 = arith.addf %280, %287 : vector<1x256xf32>
    %289 = vector.extract_strided_slice %282 {offsets = [1, 0], sizes = [1, 256], strides = [1, 1]} : vector<2x256xf32> to vector<1x256xf32>
    %290 = vector.broadcast %284 : f32 to vector<1x256xf32>
    %291 = arith.mulf %290, %289 : vector<1x256xf32>
    %292 = arith.addf %288, %291 : vector<1x256xf32>
    %c495_i32 = arith.constant 495 : i32
    %293 = tpu.dynamic_rotate %26 by %c495_i32 dim 1 : vector<2x512xf32>, i32 -> vector<2x512xf32>
    %294 = vector.extract_strided_slice %293 {offsets = [0, 0], sizes = [2, 256], strides = [1, 1]} : vector<2x512xf32> to vector<2x256xf32>
    %c18 = arith.constant 18 : index
    %295 = memref.load %arg3[%c18] : memref<50xf32, #tpu.memory_space<smem>>
    %c43 = arith.constant 43 : index
    %296 = memref.load %arg3[%c43] : memref<50xf32, #tpu.memory_space<smem>>
    %297 = vector.extract_strided_slice %294 {offsets = [0, 0], sizes = [1, 256], strides = [1, 1]} : vector<2x256xf32> to vector<1x256xf32>
    %298 = vector.broadcast %295 : f32 to vector<1x256xf32>
    %299 = arith.mulf %298, %297 : vector<1x256xf32>
    %300 = arith.addf %292, %299 : vector<1x256xf32>
    %301 = vector.extract_strided_slice %294 {offsets = [1, 0], sizes = [1, 256], strides = [1, 1]} : vector<2x256xf32> to vector<1x256xf32>
    %302 = vector.broadcast %296 : f32 to vector<1x256xf32>
    %303 = arith.mulf %302, %301 : vector<1x256xf32>
    %304 = arith.addf %300, %303 : vector<1x256xf32>
    %c479_i32 = arith.constant 479 : i32
    %305 = tpu.dynamic_rotate %26 by %c479_i32 dim 1 : vector<2x512xf32>, i32 -> vector<2x512xf32>
    %306 = vector.extract_strided_slice %305 {offsets = [0, 0], sizes = [2, 256], strides = [1, 1]} : vector<2x512xf32> to vector<2x256xf32>
    %c23 = arith.constant 23 : index
    %307 = memref.load %arg3[%c23] : memref<50xf32, #tpu.memory_space<smem>>
    %c48 = arith.constant 48 : index
    %308 = memref.load %arg3[%c48] : memref<50xf32, #tpu.memory_space<smem>>
    %309 = vector.extract_strided_slice %306 {offsets = [0, 0], sizes = [1, 256], strides = [1, 1]} : vector<2x256xf32> to vector<1x256xf32>
    %310 = vector.broadcast %307 : f32 to vector<1x256xf32>
    %311 = arith.mulf %310, %309 : vector<1x256xf32>
    %312 = arith.addf %304, %311 : vector<1x256xf32>
    %313 = vector.extract_strided_slice %306 {offsets = [1, 0], sizes = [1, 256], strides = [1, 1]} : vector<2x256xf32> to vector<1x256xf32>
    %314 = vector.broadcast %308 : f32 to vector<1x256xf32>
    %315 = arith.mulf %314, %313 : vector<1x256xf32>
    %316 = arith.addf %312, %315 : vector<1x256xf32>
    %cst_35 = arith.constant 0.000000e+00 : f32
    %317 = vector.broadcast %cst_35 : f32 to vector<1x256xf32>
    %318 = arith.select %255, %316, %317 : vector<1x256xi1>, vector<1x256xf32>
    %319 = arith.addf %250, %318 : vector<1x256xf32>
    %c0_i32_36 = arith.constant 0 : i32
    %320 = vector.broadcast %c0_i32_36 : i32 to vector<1x256xi32>
    %321 = arith.cmpi sge, %43, %320 : vector<1x256xi32>
    %c14_i32 = arith.constant 14 : i32
    %322 = vector.broadcast %c14_i32 : i32 to vector<1x256xi32>
    %323 = arith.cmpi slt, %43, %322 : vector<1x256xi32>
    %324 = arith.andi %321, %323 : vector<1x256xi1>
    %cst_37 = arith.constant 0.000000e+00 : f32
    %325 = vector.broadcast %cst_37 : f32 to vector<1x256xf32>
    %c30_i32 = arith.constant 30 : i32
    %326 = tpu.dynamic_rotate %26 by %c30_i32 dim 1 : vector<2x512xf32>, i32 -> vector<2x512xf32>
    %327 = vector.extract_strided_slice %326 {offsets = [0, 0], sizes = [2, 256], strides = [1, 1]} : vector<2x512xf32> to vector<2x256xf32>
    %c4 = arith.constant 4 : index
    %328 = memref.load %arg3[%c4] : memref<50xf32, #tpu.memory_space<smem>>
    %c29 = arith.constant 29 : index
    %329 = memref.load %arg3[%c29] : memref<50xf32, #tpu.memory_space<smem>>
    %330 = vector.extract_strided_slice %327 {offsets = [0, 0], sizes = [1, 256], strides = [1, 1]} : vector<2x256xf32> to vector<1x256xf32>
    %331 = vector.broadcast %328 : f32 to vector<1x256xf32>
    %332 = arith.mulf %331, %330 : vector<1x256xf32>
    %333 = arith.addf %325, %332 : vector<1x256xf32>
    %334 = vector.extract_strided_slice %327 {offsets = [1, 0], sizes = [1, 256], strides = [1, 1]} : vector<2x256xf32> to vector<1x256xf32>
    %335 = vector.broadcast %329 : f32 to vector<1x256xf32>
    %336 = arith.mulf %335, %334 : vector<1x256xf32>
    %337 = arith.addf %333, %336 : vector<1x256xf32>
    %c14_i32_38 = arith.constant 14 : i32
    %338 = tpu.dynamic_rotate %26 by %c14_i32_38 dim 1 : vector<2x512xf32>, i32 -> vector<2x512xf32>
    %339 = vector.extract_strided_slice %338 {offsets = [0, 0], sizes = [2, 256], strides = [1, 1]} : vector<2x512xf32> to vector<2x256xf32>
    %c9 = arith.constant 9 : index
    %340 = memref.load %arg3[%c9] : memref<50xf32, #tpu.memory_space<smem>>
    %c34 = arith.constant 34 : index
    %341 = memref.load %arg3[%c34] : memref<50xf32, #tpu.memory_space<smem>>
    %342 = vector.extract_strided_slice %339 {offsets = [0, 0], sizes = [1, 256], strides = [1, 1]} : vector<2x256xf32> to vector<1x256xf32>
    %343 = vector.broadcast %340 : f32 to vector<1x256xf32>
    %344 = arith.mulf %343, %342 : vector<1x256xf32>
    %345 = arith.addf %337, %344 : vector<1x256xf32>
    %346 = vector.extract_strided_slice %339 {offsets = [1, 0], sizes = [1, 256], strides = [1, 1]} : vector<2x256xf32> to vector<1x256xf32>
    %347 = vector.broadcast %341 : f32 to vector<1x256xf32>
    %348 = arith.mulf %347, %346 : vector<1x256xf32>
    %349 = arith.addf %345, %348 : vector<1x256xf32>
    %c510_i32 = arith.constant 510 : i32
    %350 = tpu.dynamic_rotate %26 by %c510_i32 dim 1 : vector<2x512xf32>, i32 -> vector<2x512xf32>
    %351 = vector.extract_strided_slice %350 {offsets = [0, 0], sizes = [2, 256], strides = [1, 1]} : vector<2x512xf32> to vector<2x256xf32>
    %c14 = arith.constant 14 : index
    %352 = memref.load %arg3[%c14] : memref<50xf32, #tpu.memory_space<smem>>
    %c39 = arith.constant 39 : index
    %353 = memref.load %arg3[%c39] : memref<50xf32, #tpu.memory_space<smem>>
    %354 = vector.extract_strided_slice %351 {offsets = [0, 0], sizes = [1, 256], strides = [1, 1]} : vector<2x256xf32> to vector<1x256xf32>
    %355 = vector.broadcast %352 : f32 to vector<1x256xf32>
    %356 = arith.mulf %355, %354 : vector<1x256xf32>
    %357 = arith.addf %349, %356 : vector<1x256xf32>
    %358 = vector.extract_strided_slice %351 {offsets = [1, 0], sizes = [1, 256], strides = [1, 1]} : vector<2x256xf32> to vector<1x256xf32>
    %359 = vector.broadcast %353 : f32 to vector<1x256xf32>
    %360 = arith.mulf %359, %358 : vector<1x256xf32>
    %361 = arith.addf %357, %360 : vector<1x256xf32>
    %c494_i32 = arith.constant 494 : i32
    %362 = tpu.dynamic_rotate %26 by %c494_i32 dim 1 : vector<2x512xf32>, i32 -> vector<2x512xf32>
    %363 = vector.extract_strided_slice %362 {offsets = [0, 0], sizes = [2, 256], strides = [1, 1]} : vector<2x512xf32> to vector<2x256xf32>
    %c19 = arith.constant 19 : index
    %364 = memref.load %arg3[%c19] : memref<50xf32, #tpu.memory_space<smem>>
    %c44 = arith.constant 44 : index
    %365 = memref.load %arg3[%c44] : memref<50xf32, #tpu.memory_space<smem>>
    %366 = vector.extract_strided_slice %363 {offsets = [0, 0], sizes = [1, 256], strides = [1, 1]} : vector<2x256xf32> to vector<1x256xf32>
    %367 = vector.broadcast %364 : f32 to vector<1x256xf32>
    %368 = arith.mulf %367, %366 : vector<1x256xf32>
    %369 = arith.addf %361, %368 : vector<1x256xf32>
    %370 = vector.extract_strided_slice %363 {offsets = [1, 0], sizes = [1, 256], strides = [1, 1]} : vector<2x256xf32> to vector<1x256xf32>
    %371 = vector.broadcast %365 : f32 to vector<1x256xf32>
    %372 = arith.mulf %371, %370 : vector<1x256xf32>
    %373 = arith.addf %369, %372 : vector<1x256xf32>
    %c478_i32 = arith.constant 478 : i32
    %374 = tpu.dynamic_rotate %26 by %c478_i32 dim 1 : vector<2x512xf32>, i32 -> vector<2x512xf32>
    %375 = vector.extract_strided_slice %374 {offsets = [0, 0], sizes = [2, 256], strides = [1, 1]} : vector<2x512xf32> to vector<2x256xf32>
    %c24 = arith.constant 24 : index
    %376 = memref.load %arg3[%c24] : memref<50xf32, #tpu.memory_space<smem>>
    %c49 = arith.constant 49 : index
    %377 = memref.load %arg3[%c49] : memref<50xf32, #tpu.memory_space<smem>>
    %378 = vector.extract_strided_slice %375 {offsets = [0, 0], sizes = [1, 256], strides = [1, 1]} : vector<2x256xf32> to vector<1x256xf32>
    %379 = vector.broadcast %376 : f32 to vector<1x256xf32>
    %380 = arith.mulf %379, %378 : vector<1x256xf32>
    %381 = arith.addf %373, %380 : vector<1x256xf32>
    %382 = vector.extract_strided_slice %375 {offsets = [1, 0], sizes = [1, 256], strides = [1, 1]} : vector<2x256xf32> to vector<1x256xf32>
    %383 = vector.broadcast %377 : f32 to vector<1x256xf32>
    %384 = arith.mulf %383, %382 : vector<1x256xf32>
    %385 = arith.addf %381, %384 : vector<1x256xf32>
    %cst_39 = arith.constant 0.000000e+00 : f32
    %386 = vector.broadcast %cst_39 : f32 to vector<1x256xf32>
    %387 = arith.select %324, %385, %386 : vector<1x256xi1>, vector<1x256xf32>
    %388 = arith.addf %319, %387 : vector<1x256xf32>
    %cst_40 = arith.constant 5.000000e-01 : f32
    %389 = vector.broadcast %cst_40 : f32 to vector<1x256xf32>
    %390 = arith.mulf %389, %388 : vector<1x256xf32>
    %391 = math.tanh %390 : vector<1x256xf32>
    %cst_41 = arith.constant 5.000000e-01 : f32
    %392 = vector.broadcast %cst_41 : f32 to vector<1x256xf32>
    %393 = arith.mulf %392, %391 : vector<1x256xf32>
    %cst_42 = arith.constant 5.000000e-01 : f32
    %394 = vector.broadcast %cst_42 : f32 to vector<1x256xf32>
    %395 = arith.addf %393, %394 : vector<1x256xf32>
    %396 = vector.broadcast %395 : vector<1x256xf32> to vector<32x256xf32>
    %397 = arith.mulf %17, %396 : vector<32x256xf32>
    %c0_43 = arith.constant 0 : index
    %c0_44 = arith.constant 0 : index
    %c0_45 = arith.constant 0 : index
    %398 = vector.load %arg4[%c0_43, %c0_44, %c0_45] : memref<1x32x256xf32, #tpu.memory_space<vmem>>, vector<1x32x256xf32>
    %399 = vector.shape_cast %398 : vector<1x32x256xf32> to vector<32x256xf32>
    %400 = vector.shape_cast %397 : vector<32x256xf32> to vector<1x32x256xf32>
    tpu.vector_store %arg4[%c0_43, %c0_44, %c0_45], %400 {strides = array<i32>} : memref<1x32x256xf32, #tpu.memory_space<vmem>>, vector<1x32x256xf32>,
    return
  }
  func.func @transform_0(%arg0: i32) -> (i32, i32, i32) {
    %c0_i32 = arith.constant 0 : i32
    %c0_i32_0 = arith.constant 0 : i32
    %c0_i32_1 = arith.constant 0 : i32
    return %arg0, %c0_i32, %c0_i32_0 : i32, i32, i32
  }
  func.func @transform_1(%arg0: i32) -> (i32, i32) {
    %c0_i32 = arith.constant 0 : i32
    %c0_i32_0 = arith.constant 0 : i32
    %c0_i32_1 = arith.constant 0 : i32
    return %c0_i32, %c0_i32_0 : i32, i32
  }
  func.func @transform_2(%arg0: i32) -> i32 {
    %c0_i32 = arith.constant 0 : i32
    %c0_i32_0 = arith.constant 0 : i32
    return %c0_i32 : i32
  }
  func.func @transform_3(%arg0: i32) -> (i32, i32, i32) {
    %c0_i32 = arith.constant 0 : i32
    %c0_i32_0 = arith.constant 0 : i32
    %c0_i32_1 = arith.constant 0 : i32
    return %arg0, %c0_i32, %c0_i32_0 : i32, i32, i32
  }
}

</mosaic_0001>

<bundles_post_ra>
// kernel: tpu_custom_call.1
= control target key start
LH: loop header
LB: loop body
LE: loop exit
PB: predicated region body
PF: predicated region fallthrough
CT: control target
= control target key end

     0   :  { %s2527_s0 = inlined_call_operand.hbm [shape: f32[2,32,256], index: 0, kind: input, shape index: {}]   ;;  %s2528_s1 = inlined_call_operand.vmem [shape: f32[32,1], index: 1, kind: input, shape index: {}]   ;;  %s2529_s2 = inlined_call_operand.vmem [shape: f32[50], index: 2, kind: input, shape index: {}]   ;;  %s2530_s3 = inlined_call_operand.hbm [shape: f32[2,32,256], index: 3, kind: output, shape index: {}]  }
   0x1   :  { %2592 = sst [smem:[#allocation34_spill]] %s2527_s0 }
   0x2   :  { %2593 = sst [smem:[#allocation35_spill]] %s2528_s1 }
   0x3   :  { %2594 = sst [smem:[#allocation36_spill]] %s2529_s2 }
   0x4   :  { %2595 = sst [smem:[#allocation37_spill]] %s2530_s3 }
   0x5   :  { %8 = vsyncpa [#allocation3], 0 }
   0x6   :  { %10 = vsyncpa [#allocation3 + $0x1], 0 }
   0x7   :  { %11 = vsyncpa [#allocation5], 0 }
   0x8   :  { %12 = vsyncpa [#allocation4], 0 }
   0x9   :  { %14 = vsyncpa [#allocation4 + $0x1], 0  ;;  %s1506_s12 = smov 0   ;;  %s1508_s13 = smov 0  }
   0xa   :  { %s1510_s14 = smov 0   ;;  %s1512_s15 = smov 0  }
   0xb LB: > { %2596 = sst [smem:[#allocation11_spill]] %s1441_s12  ;;  %s1527_s16 = sadd.s32 4294967295, %s1453_s15   ;;  %s1453_s15 = sphi %s1512_s15, %s2737_s15   ;;  %s1449_s14 = sphi %s1510_s14, %s2740_s14   ;;  %s1445_s13 = sphi %s1508_s13, %s2739_s13   ;;  %s1441_s12 = sphi %s1506_s12, %s2738_s12  }
   0xc   : > { %2597 = sst [smem:[#allocation12_spill]] %s1445_s13  ;;  %s1176_s17 = sadd.s32 4294967294, %s1453_s15  }
   0xd   : > { %2598 = sst [smem:[#allocation13_spill]] %s1449_s14  ;;  %s1531_s18 = sadd.s32 1, %s1453_s15  }
   0xe   : > { %2599 = sst [smem:[#allocation14_spill]] %s1453_s15  ;;  %s27_s19 = sadd.s32 1, %s1449_s14 }
   0xf   : > { %2600 = sst [smem:[#allocation15_spill]] %s1527_s16  ;;  %s24_s20 = ssub.s32 %s1453_s15, %s1531_s18 }
  0x10   : > { %2601 = sst [smem:[#allocation16_spill]] %s1531_s18  ;;  %p34_p0 = scmp.ne.s32.totalorder %s1449_s14, %s1445_s13 }
  0x11   : > { %p25_p1 = scmp.eq.s32.totalorder %s24_s20, 0  ;;  %p35_p2 = scmp.eq.s32.totalorder %s1453_s15, 0 }
  0x12   : > { %p40_p3 = scmp.ne.s32.totalorder %s1445_s13, %s1441_s12  ;;  %p2532_p4 = scmp.eq.s32.totalorder %s1527_s16, 0 }
  0x13   : > { %s1543_s21 = scalar_select %p25_p1, %s1449_s14, %s27_s19  }
  0x14   : > { %p1545_p5 = por %p35_p2, %p34_p0  ;;  %p1551_p6 = por %p2532_p4, %p40_p3 }
  0x15   : > { %2602 = sst [smem:[#allocation17_spill]] %s1543_s21  ;;  %p106_p7 = scmp.eq.s32.totalorder %s1527_s16, 1 }
  0x16   : > { %s2604_s23 = scalar_select %p1551_p6, 1, 0 }
  0x17   : > { %p112_p8 = scmp.eq.s32.totalorder %s1176_s17, 1  ;;  %p1177_p9 = scmp.ge.s32.totalorder %s1453_s15, 1 }
  0x18   : > { %p119_p10 = scmp.lt.s32.totalorder %s1453_s15, 3  ;;  %p1558_p11 = por %p106_p7, %p34_p0 }
  0x19   : > { %p1562_p12 = por %p112_p8, %p40_p3  ;;  %s2610_s2 = sld [smem:[#allocation36_spill]] }
  0x1a   : > { %s2605_s24 = scalar_select %p1558_p11, 1, 0 }
  0x1b   : > { %s2607_s25 = scalar_select %p1562_p12, 1, 0 }
  0x1c   : > { %2606 = sst [smem:[#allocation18_spill]] %s2605_s24  ;;  %p1566_p13 = pnand %p1177_p9, %p119_p10 }
  0x1d   : > { %2608 = sst [smem:[#allocation19_spill]] %s2607_s25  ;;  %p1268_p2 = scmp.lt.s32.totalorder %s1453_s15, 2 }
  0x1e   : > { %p1255_p1 = pneg %p1566_p13  ;;  %s146_s4 = sand.u32 1, %s1449_s14  }
  0x1f   : > { %s135_s29 = sshll.u32 %s2610_s2, 4  ;;  %p1586_p3 = pnand %p1268_p2, %p1545_p5  ;;  %s136_s29 = int_to_ptr.vmem [resolvable:$true] %s135_s29 }
  0x20   : > { %p1579_p7 = pnand %p1255_p1, %p2532_p4  ;;  %s1180_s6 = sshll.u32 %s146_s4, 6 }
  0x21   : > { %s1338_s7 = scalar_lea.vmem %s136_s29, 16  ;;  %p1346_p12 = scmp.lt.s32.totalorder %s136_s29, %s136_s29 }
  0x22   : > { %p1339_p8 = scmp.ne.s32.totalorder %s136_s29, %s1338_s7  ;;  %p1340_p9 = pneg %p1579_p7 }
  0x23   : > { %p1347_p11 = scmp.lt.s32.totalorder %s1338_s7, %s1338_s7 }
  0x24   : > { %p1341_p10 = pnand %p1340_p9, %p1339_p8 }
  0x25   : > { %p1348_p1 = por %p1347_p11, %p1346_p12 }
  0x26   : > { %p1342_p0 = pneg %p1341_p10 }
  0x28   : > { %p1349_p4 = pnand %p1348_p1, %p1342_p0 }
  0x2a   : > { %1352 = shalt.err (!%p1349_p4)
}
  0x2b   : > { %s1455_s8 = smov [#allocation6]   ;;  %s1241_s9 = sshll.u32 %s1453_s15, 10 }
  0x2c   : > { %1258 = dma.vmem_to_smem (!%p1579_p7), %s136_s29, 16, %s1455_s8, [#allocation5]  }
  0x2d   : > { %s150_s10 = scalar_lea.vmem [#allocation2], %s1180_s6  ;;  %s2613_s0 = sld [smem:[#allocation34_spill]] }
  0x2e   : > { %s157_s11 = sshll.u32 %s150_s10, 4  ;;  %s1602_s22 = scalar_lea.sflag [#allocation3], %s146_s4  ;;  %s1600_s11 = int_to_ptr.vmem [resolvable:$true] %s157_s11 }
  0x2f   : > { %p1355_p5 = pneg %p1586_p3 }
  0x33   : > { %s1598_s20 = scalar_lea.hbm %s2613_s0, %s1241_s9  ;;  %s1358_s30 = scalar_lea.hbm %s2613_s0, 2048 }
  0x34   : > { %s1353_s27 = scalar_lea.hbm %s1598_s20, 1024  ;;  %p1359_p0 = scmp.lt.u32.totalorder %s1598_s20, %s2613_s0 }
  0x35   : > { %p1354_p4 = scmp.ne.s32.totalorder %s1598_s20, %s1353_s27  ;;  %p1360_p2 = scmp.lt.u32.totalorder %s1358_s30, %s1353_s27 }
  0x36   : > { %p1362_p8 = scmp.lt.u32.totalorder %s1353_s27, %s1598_s20 }
  0x37   : > { %p1356_p11 = pnand %p1355_p5, %p1354_p4  ;;  %p1361_p7 = por %p1360_p2, %p1359_p0 }
  0x39   : > { %p1357_p12 = pneg %p1356_p11  ;;  %p1363_p9 = por %p1362_p8, %p1361_p7 }
  0x3b   : > { %p1364_p10 = pnand %p1363_p9, %p1357_p12 }
  0x3d   : > { %1367 = shalt.err (!%p1364_p10)
}
  0x3e   : > { %s1368_s4 = scalar_lea.vmem %s1600_s11, 1024  ;;  %s1456_s8 = smov [#allocation2]  }
  0x3f   : > { %p1369_p1 = scmp.ne.s32.totalorder %s1600_s11, %s1368_s4  ;;  %s1373_s9 = sshll.u32 %s1456_s8, 4  ;;  %s1374_s9 = int_to_ptr.vmem [resolvable:$false] %s1373_s9 }
  0x40   : > { %s1375_s10 = scalar_lea.vmem %s1374_s9, 2048  ;;  %p1376_p6 = scmp.lt.s32.totalorder %s1600_s11, %s1374_s9 }
  0x41   : > { %p1371_p4 = pnand %p1369_p1, %p1355_p5  ;;  %p1377_p0 = scmp.lt.s32.totalorder %s1375_s10, %s1368_s4 }
  0x43   : > { %p1372_p11 = pneg %p1371_p4  ;;  %p1378_p2 = por %p1377_p0, %p1376_p6 }
  0x45   : > { %p1379_p7 = pnand %p1378_p2, %p1372_p11 }
  0x47   : > { %1382 = shalt.err (!%p1379_p7)
}
  0x48   : > { %s1457_s17 = smov 256   ;;  %s1458_s19 = smov 16  }
  0x49   : > { %1262 = dma.hbm_to_vmem [thread:$0]  (!%p1586_p3), %s1598_s20, 1024, %s1600_s11, %s1602_s22, %s1457_s17, %s1457_s17, %s1458_s19  }
  0x4a   : > { %169 = sbr.rel (%p1566_p13) target bundleno = 816 (0x330), region = 32 }
  0x51   : > { %s1633_s27 = sand.u32 1, %s1445_s13   ;;  %p2615_p6 = scmp.ne.s32.totalorder %s2604_s23, 0 }
  0x52   : > { %2614 = sst [smem:[#allocation20_spill]] %s1633_s27  ;;  %s2534_s28 = sshll.u32 %s1633_s27, 6 }
  0x53   : > { %s172_s29 = scalar_lea.sflag [#allocation3], %s1633_s27  ;;  %s175_s30 = scalar_lea.vmem [#allocation2], %s2534_s28 }
  0x54   : > { %1428 = dma.done.wait (%p2615_p6), %s172_s29, 1024  }
  0x55   : > { %1430 = vsyncadd (%p2615_p6), %s172_s29, 4294966272  ;;  %p2616_p3 = scmp.eq.s32.totalorder %s1527_s16, 0 }
  0x57   : > { %1432 = dma.done.wait (%p2616_p3), [#allocation5], 16   ;;  %p2617_p13 = pmov %p2616_p3 }
  0x59   : > { %1434 = vsyncadd (%p2617_p13), [#allocation5], 4294967280 }
  0x5a   : > { %184 = sfence }
  0x5b   : > { %v1647_v0 = vld [vmem:[%s175_s30] sm:$0xff]  ;;  %v1649_v1 = vld [vmem:[%s175_s30 + $0x8] sm:$0xff]  ;;  %v1657_v5 = vld [vmem:[%s175_s30 + $0x10] sm:$0xff]  ;;  %s2618_s1 = sld [smem:[#allocation35_spill]]  ;;  %vm236_vm0 = vcmask 7168   ;;  %v1459_v35 = vmov 0.0  }
  0x5c   : > { %v1651_v2 = vld [vmem:[%s175_s30 + $0x20] sm:$0xff]  ;;  %v211_v3 = vadd.f32 %v1649_v1, %v1647_v0  ;;  %v1655_v4 = vld [vmem:[%s175_s30 + $0x28] sm:$0xff]  ;;  %v1659_v6 = vld [vmem:[%s175_s30 + $0x18] sm:$0xff]  ;;  %s1460_s4 = smov 34   ;;  %s1461_s8 = smov 18   ;;  %vm307_vm1 = vcmask 1040384  }
  0x5d   : > { %v217_v7 = vadd.f32 %v1655_v4, %v1651_v2  ;;  %v1663_v8 = vld [vmem:[%s175_s30 + $0x30] sm:$0xff]  ;;  %v1665_v9 = vld [vmem:[%s175_s30 + $0x38] sm:$0xff]  ;;  %v214_v10 = vadd.f32 %v1659_v6, %v1657_v5  ;;  %s1462_s9 = smov 2   ;;  %s1463_s10 = smov 114  }
  0x5e   : > { %212 = vadd.xlane.f32.xlu0 %v211_v3  ;;  %v220_v11 = vadd.f32 %v1665_v9, %v1663_v8  ;;  %s1464_s17 = smov 98   ;;  %s1465_s19 = smov 33  }
  0x5f   : > { %218 = vadd.xlane.f32.xlu1 %v217_v7  ;;  %s1466_s29 = smov 32   ;;  %s1467_s30 = smov 17  }
  0x60   : > { %s1468_s23 = smov 31   ;;  %s2549_s26 = smov 16  }
  0x61   : > { %v228_v15 = vld [vmem:[%s2618_s1] sm:$0xff]  ;;  %v230_v17 = vld [vmem:[%s2618_s1 + $0x10] sm:$0xff]  ;;  %v229_v18 = vld [vmem:[%s2618_s1 + $0x8] sm:$0xff]  ;;  %s2555_s5 = smov 30   ;;  %s2535_s11 = smov 15  }
  0x62   : > { %215 = vadd.xlane.f32.xlu0 %v214_v10  ;;  %v231_v22 = vld [vmem:[%s2618_s1 + $0x18] sm:$0xff]  ;;  %s2541_s20 = smov 1   ;;  %s2537_s22 = smov 113  }
  0x63   : > { %221 = vadd.xlane.f32.xlu1 %v220_v11  ;;  %s2539_s6 = smov 14   ;;  %s2543_s7 = smov 126  }
  0x64   : > { %s2545_s28 = smov 127   ;;  %s2011_s0 = sld [smem:[#allocation6 + $0x9]] }
  0x65   : > { %s2017_s1 = sld [smem:[#allocation6 + $0x22]]  ;;  %s2019_s2 = sld [smem:[#allocation6 + $0x8]] }
  0x66   : > { %s2027_s21 = sld [smem:[#allocation6 + $0x10]]  ;;  %s2032_s14 = sld [smem:[#allocation6 + $0x29]] }
  0x67   : > { %s2034_s13 = sld [smem:[#allocation6 + $0xe]]  ;;  %s2037_s18 = sld [smem:[#allocation6 + $0x27]] }
  0x68   : > { %s2039_s15 = sld [smem:[#allocation6 + $0xd]]  ;;  %s2060_s12 = sld [smem:[#allocation6 + $0x2e]] }
  0x69   : > { %s2054_s25 = sld [smem:[#allocation6 + $0x15]]  ;;  %s2074_s24 = sld [smem:[#allocation6 + $0x13]] }
  0x6a   : > { %2640 = sst [smem:[#allocation31_spill]] %s2011_s0  ;;  %s2083_s3 = sld [smem:[#allocation6 + $0x2c]] }
  0x6b   : > { %2641 = sst [smem:[#allocation32_spill]] %s2019_s2  ;;  %s2085_s27 = sld [smem:[#allocation6 + $0x12]] }
  0x6c   : > { %s2096_s16 = sld [smem:[#allocation6 + $0x2b]]  ;;  %s2123_s0 = sld [smem:[#allocation6 + $0x18]] }
  0x6d   : > { %s2125_s2 = sld [smem:[#allocation6 + $0x31]] }
  0x74   : > { %347 = vrot.lane.b32.xlu1 %v1459_v35, %s1460_s4 }
  0x78   : > { %401 = vrot.lane.b32.xlu1 %v1459_v35, %s1462_s9 }
  0x7c   : > { %455 = vrot.lane.b32.xlu1 %v1459_v35, %s1464_s17 }
  0x80   : > { %633 = vrot.lane.b32.xlu1 %v1459_v35, %s1466_s29 }
  0x84   : > { %767 = vrot.lane.b32.xlu1 %v1459_v35, %s1468_s23 }
  0x88   : > { %660 = vrot.lane.b32.xlu1 %v1459_v35, %s2549_s26 }
  0x8c   : > { %794 = vrot.lane.b32.xlu1 %v1459_v35, %s2535_s11  ;;  %s2547_s11 = smov 97  }
  0x90   : > { %571 = vrot.lane.b32.xlu1 %v1459_v35, %s2537_s22  ;;  %s2551_s22 = smov 112  }
  0x94   : > { %964 = vrot.lane.b32.xlu1 %v1459_v35, %s2543_s7  ;;  %s1481_s7 = smov 95  }
  0x98   : > { %598 = vrot.lane.b32.xlu1 %v1459_v35, %s2547_s11 }
  0xeb   : > { %v213_v12 = vpop.xlane.xlu0 %212 }
  0xec   : > { %v224_v13 = vmul.f32 0.00390625, %v213_v12  ;;  %v219_v14 = vpop.xlane.xlu1 %218 }
  0xed   : > { %v226_v16 = vmul.f32 0.00390625, %v219_v14 }
  0xee   : > { %v232_v20 = vmul.f32 %v228_v15, %v224_v13 }
  0xef   : > { %v216_v19 = vpop.xlane.xlu0 %215  ;;  %v234_v25 = vmul.f32 %v230_v17, %v226_v16 }
  0xf0   : > { %v225_v21 = vmul.f32 0.00390625, %v216_v19  ;;  %v222_v23 = vpop.xlane.xlu1 %221  ;;  %v237_v28 = vsel %vm236_vm0, %v232_v20, 0.0 }
  0xf1   : > { %v227_v24 = vmul.f32 0.00390625, %v222_v23  ;;  %v240_v31 = vsel %vm236_vm0, %v234_v25, 0.0 }
  0xf2   : > { %v233_v26 = vmul.f32 %v229_v18, %v225_v21 }
  0xf3   : > { %v235_v27 = vmul.f32 %v231_v22, %v227_v24 }
  0xf4   : > { %v238_v29 = vsel %vm236_vm0, %v233_v26, 0.0 }
  0xf5   : > { %v239_v30 = vadd.f32 %v238_v29, %v237_v28  ;;  %v242_v32 = vsel %vm236_vm0, %v235_v27, 0.0 }
  0xf7   : > { %v241_v33 = vadd.f32 %v240_v31, %v239_v30  ;;  %v1817_v30 = vpop.permute.xlu1 %347 }
  0xf9   : > { %v243_v34 = vadd.f32 %v242_v32, %v241_v33 }
  0xfb   : > { %244 = vadd.xlane.f32.xlu0 %v243_v34  ;;  %v1827_v31 = vpop.permute.xlu1 %401 }
  0xff   : > { %v1835_v33 = vpop.permute.xlu1 %455 }
 0x111   : > { %374 = vrot.lane.b32.xlu0 %v1459_v35, %s1461_s8 }
 0x115   : > { %428 = vrot.lane.b32.xlu0 %v1459_v35, %s1463_s10 }
 0x119   : > { %490 = vrot.lane.b32.xlu0 %v1459_v35, %s1465_s19 }
 0x11d   : > { %517 = vrot.lane.b32.xlu0 %v1459_v35, %s1467_s30 }
 0x121   : > { %910 = vrot.lane.b32.xlu0 %v1459_v35, %s2555_s5 }
 0x125   : > { %544 = vrot.lane.b32.xlu0 %v1459_v35, %s2541_s20  ;;  %s1480_s20 = smov 111  }
 0x129   : > { %937 = vrot.lane.b32.xlu0 %v1459_v35, %s2539_s6  ;;  %s2553_s6 = smov 110  }
 0x12a   : > { %991 = vrot.lane.b32.xlu1 %v1459_v35, %s2553_s6 }
 0x12d   : > { %821 = vrot.lane.b32.xlu0 %v1459_v35, %s2545_s28  ;;  %s1482_s28 = smov 96  }
 0x12e   : > { %875 = vrot.lane.b32.xlu1 %v1459_v35, %s1481_s7 }
 0x131   : > { %705 = vrot.lane.b32.xlu0 %v1459_v35, %s2551_s22 }
 0x135   : > { %848 = vrot.lane.b32.xlu0 %v1459_v35, %s1480_s20 }
 0x139   : > { %732 = vrot.lane.b32.xlu0 %v1459_v35, %s1482_s28 }
 0x188   : > { %v245_v36 = vpop.xlane.xlu0 %244 }
 0x189   : > { %v246_v37 = vrot.slane %v245_v36, 4 }
 0x18b   : > { %v247_v38 = vadd.f32 %v246_v37, %v245_v36  ;;  %v1847_v36 = vpop.permute.xlu1 %633 }
 0x18c   : > { %v1829_v32 = vpop.permute.xlu0 %374 }
 0x18d   : > { %v248_v39 = vrot.slane %v247_v38, 2 }
 0x18f   : > { %v249_v40 = vadd.f32 %v248_v39, %v247_v38  ;;  %v1855_v38 = vpop.permute.xlu1 %767 }
 0x190   : > { %v1837_v34 = vpop.permute.xlu0 %428 }
 0x191   : > { %v250_v41 = vrot.slane %v249_v40, 1 }
 0x193   : > { %v251_v42 = vadd.f32 %v250_v41, %v249_v40  ;;  %v1867_v40 = vpop.permute.xlu1 %660 }
 0x194   : > { %v1849_v37 = vpop.permute.xlu0 %490 }
 0x195   : > { %1243 = vpush %v251_v42 }
 0x197   : > { %v1875_v42 = vpop.permute.xlu1 %794 }
 0x198   : > { %v1857_v39 = vpop.permute.xlu0 %517 }
 0x19c   : > { %v1869_v41 = vpop.permute.xlu0 %910 }
 0x1c6   : > { %s1244_s11 = spop %1243 }
 0x1c7   : > { %s253_s26 = smul.f32 0.5, %s1244_s11  ;;  %s1483_s11 = smov 94  }
 0x1c9   : > { %v254_v43 = vstv %s253_s26  ;;  %s2634_s26 = smov 97  }
 0x1ca   : > { %1332 = vtanh.f32 %v254_v43  ;;  %v1877_v43 = vpop.permute.xlu0 %544 }
 0x1d4   : > { %v1333_v44 = vpop.eup %1332 }
 0x1d5   : > { %1245 = vpush %v1333_v44  ;;  %v1887_v44 = vpop.permute.xlu1 %571 }
 0x206   : > { %s1246_s22 = spop %1245 }
 0x207   : > { %s257_s6 = smul.f32 0.5, %s1246_s22  ;;  %s1919_s22 = sld [smem:[#allocation6 + $0x5]] }
 0x209   : > { %s258_s5 = sadd.f32 0.5, %s257_s6  ;;  %s1921_s6 = sld [smem:[#allocation6 + $0x1e]] }
 0x20b   : > { %v259_v45 = vstv %s258_s5  ;;  %s2635_s5 = smov 110  }
 0x20c   : > { %v1730_v46 = vmul.f32 %v259_v45, %v1647_v0  ;;  %v1733_v47 = vmul.f32 %v259_v45, %v1649_v1  ;;  %v1736_v48 = vmul.f32 %v259_v45, %v1657_v5  ;;  %v1739_v49 = vmul.f32 %v259_v45, %v1659_v6 }
 0x20d   : > { %v1742_v50 = vmul.f32 %v259_v45, %v1651_v2  ;;  %v1745_v51 = vmul.f32 %v259_v45, %v1655_v4  ;;  %v1748_v52 = vmul.f32 %v259_v45, %v1663_v8  ;;  %v1751_v53 = vmul.f32 %v259_v45, %v1665_v9  ;;  %v1889_v45 = vpop.permute.xlu0 %937 }
 0x20e   : > { %2619 = vst [vmem:[#allocation21_spill] sm:$0xff] %v1733_v47  ;;  %2620 = vst [vmem:[#allocation22_spill] sm:$0xff] %v1739_v49  ;;  %v286_v54 = vadd.f32 %v1736_v48, %v1730_v46  ;;  %v295_v55 = vadd.f32 %v1739_v49, %v1733_v47 }
 0x20f   : > { %2621 = vst [vmem:[#allocation23_spill] sm:$0xff] %v1742_v50  ;;  %2622 = vst [vmem:[#allocation24_spill] sm:$0xff] %v1745_v51  ;;  %v268_v56 = vmax.f32 %v1730_v46, %v1742_v50  ;;  %v269_v57 = vmax.f32 %v1736_v48, %v1748_v52  ;;  %v277_v58 = vmax.f32 %v1733_v47, %v1745_v51 }
 0x210   : > { %2623 = vst [vmem:[#allocation25_spill] sm:$0xff] %v1748_v52  ;;  %2624 = vst [vmem:[#allocation26_spill] sm:$0xff] %v1751_v53  ;;  %v278_v59 = vmax.f32 %v1739_v49, %v1751_v53  ;;  %v287_v60 = vadd.f32 %v286_v54, %v1742_v50  ;;  %v296_v61 = vadd.f32 %v295_v55, %v1745_v51  ;;  %v1894_v54 = vpop.permute.xlu1 %964 }
 0x211   : > { %v270_v62 = vmax.f32 %v268_v56, %v269_v57  ;;  %v1896_v55 = vpop.permute.xlu0 %821 }
 0x212   : > { %v279_v63 = vmax.f32 %v277_v58, %v278_v59  ;;  %v288_v0 = vadd.f32 %v287_v60, %v1748_v52  ;;  %v297_v1 = vadd.f32 %v296_v61, %v1751_v53  ;;  %v2577_v60 = vlaneseq }
 0x213   : > { %v271_v2 = vrot.slane %v270_v62, 4 }
 0x214   : > { %v280_v3 = vrot.slane %v279_v63, 4  ;;  %v289_v4 = vrot.slane %v288_v0, 4  ;;  %v298_v5 = vrot.slane %v297_v1, 4  ;;  %v1902_v56 = vpop.permute.xlu1 %598 }
 0x215   : > { %v272_v6 = vmax.f32 %v270_v62, %v271_v2  ;;  %v1904_v57 = vpop.permute.xlu0 %705 }
 0x216   : > { %v281_v7 = vmax.f32 %v279_v63, %v280_v3  ;;  %v290_v8 = vadd.f32 %v289_v4, %v288_v0  ;;  %v299_v9 = vadd.f32 %v298_v5, %v297_v1 }
 0x217   : > { %v273_v10 = vrot.slane %v272_v6, 2 }
 0x218   : > { %v282_v11 = vrot.slane %v281_v7, 2  ;;  %v291_v12 = vrot.slane %v290_v8, 2  ;;  %v300_v13 = vrot.slane %v299_v9, 2  ;;  %v1906_v58 = vpop.permute.xlu1 %991 }
 0x219   : > { %v274_v14 = vmax.f32 %v272_v6, %v273_v10  ;;  %v1908_v59 = vpop.permute.xlu0 %848 }
 0x21a   : > { %v283_v15 = vmax.f32 %v281_v7, %v282_v11  ;;  %v292_v16 = vadd.f32 %v291_v12, %v290_v8  ;;  %v301_v17 = vadd.f32 %v300_v13, %v299_v9  ;;  %v381_v7 = vstv %s1919_s22  ;;  %s1986_s22 = sld [smem:[#allocation6 + $0x4]] }
 0x21b   : > { %v275_v18 = vrot.slane %v274_v14, 1  ;;  %v386_v8 = vstv %s1921_s6  ;;  %s1992_s6 = sld [smem:[#allocation6 + $0x1d]] }
 0x21c   : > { %v284_v19 = vrot.slane %v283_v15, 1  ;;  %v293_v20 = vrot.slane %v292_v16, 1  ;;  %v302_v21 = vrot.slane %v301_v17, 1  ;;  %v1912_v61 = vpop.permute.xlu1 %875 }
 0x21d   : > { %v276_v24 = vmax.f32 %v274_v14, %v275_v18  ;;  %v1914_v62 = vpop.permute.xlu0 %732 }
 0x21e   : > { %v294_v22 = vadd.f32 %v293_v20, %v292_v16  ;;  %v303_v23 = vadd.f32 %v302_v21, %v301_v17  ;;  %v285_v25 = vmax.f32 %v283_v15, %v284_v19 }
 0x220   : > { %v305_v26 = vmul.f32 0.03125, %v294_v22  ;;  %v306_v27 = vmul.f32 0.03125, %v303_v23  ;;  %2637 = sst [smem:[#allocation28_spill]] %s1986_s22  ;;  %s2104_s22 = sld [smem:[#allocation6 + $0x30]] }
 0x221   : > { %v2660_v52 = vstv %s1992_s6 }
 0x222   : > { %v1769_v28 = vsel %vm307_vm1, %v276_v24, %v305_v26  ;;  %v1771_v29 = vsel %vm307_vm1, %v285_v25, %v306_v27 }
 0x223   : > { %345 = vrot.lane.b32.xlu0 %v1771_v29, %s1460_s4  ;;  %343 = vrot.lane.b32.xlu1 %v1769_v28, %s1460_s4  ;;  %s2625_s4 = smov 30  }
 0x226   : > { %2642 = sst [smem:[#allocation33_spill]] %s2104_s22 }
 0x227   : > { %399 = vrot.lane.b32.xlu0 %v1771_v29, %s1462_s9  ;;  %370 = vrot.lane.b32.xlu1 %v1769_v28, %s1461_s8 }
 0x22b   : > { %424 = vrot.lane.b32.xlu0 %v1769_v28, %s1463_s10  ;;  %372 = vrot.lane.b32.xlu1 %v1771_v29, %s1461_s8  ;;  %s2626_s8 = smov 16  }
 0x22f   : > { %453 = vrot.lane.b32.xlu0 %v1771_v29, %s1464_s17  ;;  %397 = vrot.lane.b32.xlu1 %v1769_v28, %s1462_s9  ;;  %s2627_s9 = smov 1  }
 0x233   : > { %486 = vrot.lane.b32.xlu0 %v1769_v28, %s1465_s19  ;;  %426 = vrot.lane.b32.xlu1 %v1771_v29, %s1463_s10  ;;  %s2628_s10 = smov 15  }
 0x237   : > { %631 = vrot.lane.b32.xlu0 %v1771_v29, %s1466_s29  ;;  %451 = vrot.lane.b32.xlu1 %v1769_v28, %s1464_s17  ;;  %s2629_s17 = smov 14  }
 0x23b   : > { %513 = vrot.lane.b32.xlu0 %v1769_v28, %s1467_s30  ;;  %488 = vrot.lane.b32.xlu1 %v1771_v29, %s1465_s19  ;;  %s2630_s19 = smov 113  }
 0x23f   : > { %765 = vrot.lane.b32.xlu0 %v1771_v29, %s1468_s23  ;;  %629 = vrot.lane.b32.xlu1 %v1769_v28, %s1466_s29  ;;  %s2631_s29 = smov 127  }
 0x243   : > { %906 = vrot.lane.b32.xlu0 %v1769_v28, %s2625_s4  ;;  %515 = vrot.lane.b32.xlu1 %v1771_v29, %s1467_s30  ;;  %s2632_s30 = smov 126  }
 0x247   : > { %658 = vrot.lane.b32.xlu0 %v1771_v29, %s2626_s8  ;;  %763 = vrot.lane.b32.xlu1 %v1769_v28, %s1468_s23  ;;  %s2633_s23 = smov 112  }
 0x24b   : > { %540 = vrot.lane.b32.xlu0 %v1769_v28, %s2627_s9  ;;  %908 = vrot.lane.b32.xlu1 %v1771_v29, %s2625_s4  ;;  %s1931_s4 = sld [smem:[#allocation6 + $0x23]] }
 0x24f   : > { %792 = vrot.lane.b32.xlu0 %v1771_v29, %s2628_s10  ;;  %656 = vrot.lane.b32.xlu1 %v1769_v28, %s2626_s8  ;;  %s2062_s8 = sld [smem:[#allocation6 + $0x11]] }
 0x253   : > { %933 = vrot.lane.b32.xlu0 %v1769_v28, %s2629_s17  ;;  %542 = vrot.lane.b32.xlu1 %v1771_v29, %s2627_s9  ;;  %s1936_s9 = sld [smem:[#allocation6 + $0xf]] }
 0x257   : > { %569 = vrot.lane.b32.xlu0 %v1771_v29, %s2630_s19  ;;  %790 = vrot.lane.b32.xlu1 %v1769_v28, %s2628_s10  ;;  %s1938_s10 = sld [smem:[#allocation6 + $0x28]] }
 0x25b   : > { %817 = vrot.lane.b32.xlu0 %v1769_v28, %s2631_s29  ;;  %935 = vrot.lane.b32.xlu1 %v1771_v29, %s2629_s17  ;;  %s1940_s17 = sld [smem:[#allocation6 + $0x2d]] }
 0x25f   : > { %962 = vrot.lane.b32.xlu0 %v1771_v29, %s2632_s30  ;;  %567 = vrot.lane.b32.xlu1 %v1769_v28, %s2630_s19  ;;  %s1947_s19 = sld [smem:[#allocation6 + $0x14]] }
 0x263   : > { %701 = vrot.lane.b32.xlu0 %v1769_v28, %s2633_s23  ;;  %819 = vrot.lane.b32.xlu1 %v1771_v29, %s2631_s29  ;;  %s1965_s29 = sld [smem:[#allocation6 + $0x25]] }
 0x267   : > { %596 = vrot.lane.b32.xlu0 %v1771_v29, %s2634_s26  ;;  %960 = vrot.lane.b32.xlu1 %v1769_v28, %s2632_s30  ;;  %s1968_s30 = sld [smem:[#allocation6 + $0x1]] }
 0x26b   : > { %844 = vrot.lane.b32.xlu0 %v1769_v28, %s1480_s20  ;;  %703 = vrot.lane.b32.xlu1 %v1771_v29, %s2633_s23  ;;  %s1972_s23 = sld [smem:[#allocation6 + $0xc]] }
 0x26f   : > { %989 = vrot.lane.b32.xlu0 %v1771_v29, %s2635_s5  ;;  %594 = vrot.lane.b32.xlu1 %v1769_v28, %s2634_s26  ;;  %s1974_s26 = sld [smem:[#allocation6 + $0x1a]] }
 0x273   : > { %728 = vrot.lane.b32.xlu0 %v1769_v28, %s1482_s28  ;;  %846 = vrot.lane.b32.xlu1 %v1771_v29, %s1480_s20  ;;  %s1910_s20 = sld [smem:[#allocation6]] }
 0x277   : > { %873 = vrot.lane.b32.xlu0 %v1771_v29, %s1481_s7  ;;  %987 = vrot.lane.b32.xlu1 %v1769_v28, %s2635_s5  ;;  %s1978_s5 = sld [smem:[#allocation6 + $0x6]] }
 0x279   : > { %v354_v2 = vstv %s1910_s20  ;;  %s1984_s20 = sld [smem:[#allocation6 + $0x1b]] }
 0x27b   : > { %1014 = vrot.lane.b32.xlu0 %v1769_v28, %s1483_s11  ;;  %730 = vrot.lane.b32.xlu1 %v1771_v29, %s1482_s28  ;;  %s1187_s28 = sld [smem:[#allocation6 + $0x19]] }
 0x27f   : > { %871 = vrot.lane.b32.xlu1 %v1769_v28, %s1481_s7  ;;  %1018 = vrot.lane.b32.xlu0 %v1459_v35, %s1483_s11  ;;  %v1917_v35 = vand.u32 127, %v2577_v60  ;;  %s1929_s7 = sld [smem:[#allocation6 + $0xa]] }
 0x281   : > { %vm349_vm2 = vcmp.lt.s32.totalorder %v1917_v35, 34  ;;  %v359_v63 = vstv %s1187_s28  ;;  %vm376_vm3 = vcmp.lt.s32.totalorder %v1917_v35, 18  ;;  %vm403_vm4 = vcmp.lt.s32.totalorder %v1917_v35, 2  ;;  %s1982_s28 = sld [smem:[#allocation6 + $0x2]] }
 0x282   : > { %vm457_vm5 = vcmp.lt.s32.totalorder %v1917_v35, 98  ;;  %vm430_vm6 = vcmp.lt.s32.totalorder %v1917_v35, 114  ;;  %vm492_vm7 = vcmp.lt.s32.totalorder %v1917_v35, 33  ;;  %vm519_vm8 = vcmp.lt.s32.totalorder %v1917_v35, 17 }
 0x283   : > { %1016 = vrot.lane.b32.xlu1 %v1771_v29, %s1483_s11  ;;  %s1980_s11 = sld [smem:[#allocation6 + $0x1f]]  ;;  %vm635_vm9 = vcmp.lt.s32.totalorder %v1917_v35, 32  ;;  %vm912_vm10 = vcmp.lt.s32.totalorder %v1917_v35, 30  ;;  %vm769_vm11 = vcmp.lt.s32.totalorder %v1917_v35, 31  ;;  %vm662_vm12 = vcmp.lt.s32.totalorder %v1917_v35, 16 }
 0x284   : > { %vm546_vm14 = vcmp.lt.s32.totalorder %v1917_v35, 1  ;;  %vm939_vm15 = vcmp.lt.s32.totalorder %v1917_v35, 14  ;;  %vm796_vm0 = vcmp.lt.s32.totalorder %v1917_v35, 15  ;;  %vm573_vm1 = vcmp.lt.s32.totalorder %v1917_v35, 113 }
 0x287   : > { %2636 = sst [smem:[#allocation27_spill]] %s1982_s28  ;;  %s2098_s28 = sld [smem:[#allocation6 + $0x17]] }
 0x288   : > { %s2643_s22 = sld [smem:[#allocation27_spill]] }
 0x295   : > { %v344_v0 = vpop.permute.xlu1 %343  ;;  %v346_v1 = vpop.permute.xlu0 %345 }
 0x296   : > { %v351_v3 = vsel %vm349_vm2, %v1817_v30, %v344_v0  ;;  %v350_v4 = vsel %vm349_vm2, %v344_v0, %v346_v1  ;;  %v408_v30 = vstv %s1929_s7  ;;  %s1994_s7 = sld [smem:[#allocation6 + $0x3]]  ;;  %vm966_vm2 = vcmp.lt.s32.totalorder %v1917_v35, 126 }
 0x297   : > { %v360_v5 = vmul.f32 %v359_v63, %v351_v3  ;;  %v361_v6 = vmul.f32 %v359_v63, %v350_v4  ;;  %v355_v9 = vmul.f32 %v354_v2, %v351_v3  ;;  %v356_v18 = vmul.f32 %v354_v2, %v350_v4 }
 0x299   : > { %v364_v10 = vrot.slane %v360_v5, 1  ;;  %v371_v11 = vpop.permute.xlu1 %370  ;;  %v400_v12 = vpop.permute.xlu0 %399  ;;  %v365_v15 = vrot.slane %v361_v6, 1 }
 0x29a   : > { %v378_v13 = vsel %vm376_vm3, %v1829_v32, %v371_v11  ;;  %v413_v32 = vstv %s1931_s4  ;;  %s1996_s4 = sld [smem:[#allocation6 + $0x1c]] }
 0x29b   : > { %v368_v14 = vadd.f32 %v364_v10, %v355_v9  ;;  %v382_v16 = vmul.f32 %v381_v7, %v378_v13  ;;  %v387_v17 = vmul.f32 %v386_v8, %v378_v13  ;;  %v369_v24 = vadd.f32 %v365_v15, %v356_v18 }
 0x29c   : > { %v435_v10 = vstv %s1936_s9  ;;  %2638 = sst [smem:[#allocation29_spill]] %s1994_s7  ;;  %s1998_s9 = sld [smem:[#allocation6 + $0xb]] }
 0x29d   : > { %v384_v19 = vadd.f32 %v382_v16, %v368_v14  ;;  %v391_v20 = vrot.slane %v387_v17, 1  ;;  %v373_v21 = vpop.permute.xlu1 %372  ;;  %v425_v22 = vpop.permute.xlu0 %424  ;;  %v467_v16 = vstv %s1940_s17  ;;  %s2005_s17 = sld [smem:[#allocation6 + $0x7]]  ;;  %s2106_s7 = sld [smem:[#allocation6 + $0x16]] }
 0x29e   : > { %v377_v23 = vsel %vm376_vm3, %v371_v11, %v373_v21  ;;  %v440_v11 = vstv %s1938_s10  ;;  %s2003_s10 = sld [smem:[#allocation6 + $0x24]]  ;;  %vm600_vm3 = vcmp.lt.s32.totalorder %v1917_v35, 97 }
 0x29f   : > { %v395_v25 = vadd.f32 %v391_v20, %v384_v19  ;;  %v383_v26 = vmul.f32 %v381_v7, %v377_v23  ;;  %v388_v27 = vmul.f32 %v386_v8, %v377_v23 }
 0x2a1   : > { %v385_v63 = vadd.f32 %v383_v26, %v369_v24  ;;  %v392_v0 = vrot.slane %v388_v27, 1  ;;  %v398_v1 = vpop.permute.xlu1 %397  ;;  %v454_v2 = vpop.permute.xlu0 %453 }
 0x2a2   : > { %v404_v3 = vsel %vm403_vm4, %v398_v1, %v400_v12  ;;  %v405_v4 = vsel %vm403_vm4, %v1827_v31, %v398_v1  ;;  %v458_v18 = vsel %vm457_vm5, %v454_v2, %v1835_v33  ;;  %vm823_vm4 = vcmp.lt.s32.totalorder %v1917_v35, 127 }
 0x2a3   : > { %v396_v5 = vadd.f32 %v392_v0, %v385_v63  ;;  %v409_v6 = vmul.f32 %v408_v30, %v405_v4  ;;  %v410_v7 = vmul.f32 %v408_v30, %v404_v3  ;;  %v414_v8 = vmul.f32 %v413_v32, %v405_v4 }
 0x2a4   : > { %v415_v9 = vmul.f32 %v413_v32, %v404_v3  ;;  %v462_v30 = vstv %s1947_s19  ;;  %2639 = sst [smem:[#allocation30_spill]] %s2003_s10  ;;  %s2009_s19 = sld [smem:[#allocation6 + $0x20]] }
 0x2a5   : > { %v411_v13 = vadd.f32 %v409_v6, %v395_v25  ;;  %v412_v14 = vadd.f32 %v410_v7, %v396_v5  ;;  %v418_v15 = vrot.slane %v414_v8, 1  ;;  %v427_v17 = vpop.permute.xlu1 %426  ;;  %v1955_v12 = vpop.permute.xlu0 %486  ;;  %v464_v7 = vmul.f32 %v462_v30, %v458_v18  ;;  %s2113_s10 = sld [smem:[#allocation6 + $0x2f]] }
 0x2a6   : > { %v419_v31 = vrot.slane %v415_v9, 1  ;;  %v431_v19 = vsel %vm430_vm6, %v427_v17, %v1837_v34  ;;  %v432_v20 = vsel %vm430_vm6, %v425_v22, %v427_v17  ;;  %v469_v34 = vmul.f32 %v467_v16, %v458_v18 }
 0x2a7   : > { %v422_v21 = vadd.f32 %v418_v15, %v411_v13  ;;  %v436_v23 = vmul.f32 %v435_v10, %v432_v20  ;;  %v437_v24 = vmul.f32 %v435_v10, %v431_v19  ;;  %v441_v25 = vmul.f32 %v440_v11, %v432_v20 }
 0x2a8   : > { %v423_v26 = vadd.f32 %v419_v31, %v412_v14  ;;  %v442_v27 = vmul.f32 %v440_v11, %v431_v19  ;;  %v473_v13 = vrot.slane %v469_v34, 1  ;;  %v690_v15 = vstv %s1965_s29  ;;  %s2025_s29 = sld [smem:[#allocation6 + $0x21]] }
 0x2a9   : > { %v438_v32 = vadd.f32 %v436_v23, %v422_v21  ;;  %v445_v63 = vrot.slane %v441_v25, 1  ;;  %v452_v33 = vpop.permute.xlu1 %451  ;;  %v1970_v0 = vpop.permute.xlu0 %631  ;;  %v2022_v19 = vmul.f32 %v690_v15, %v1771_v29  ;;  %v685_v20 = vstv %s1972_s23  ;;  %s2052_s23 = sld [smem:[#allocation6 + $0x26]] }
 0x2aa   : > { %v439_v22 = vadd.f32 %v437_v24, %v423_v26  ;;  %v446_v1 = vrot.slane %v442_v27, 1  ;;  %v459_v3 = vsel %vm457_vm5, %v452_v33, %v454_v2  ;;  %v2030_v21 = vmul.f32 %v690_v15, %v1769_v28 }
 0x2ab   : > { %v449_v4 = vadd.f32 %v445_v63, %v438_v32  ;;  %v463_v5 = vmul.f32 %v462_v30, %v459_v3  ;;  %v468_v6 = vmul.f32 %v467_v16, %v459_v3  ;;  %v312_v23 = vadd.s32 128, %v1917_v35 }
 0x2ac   : > { %v450_v8 = vadd.f32 %v446_v1, %v439_v22  ;;  %v2047_v26 = vmul.f32 %v685_v20, %v1771_v29  ;;  %v2050_v27 = vmul.f32 %v685_v20, %v1769_v28  ;;  %v497_v32 = vstv %s1968_s30  ;;  %s2650_s30 = sld [smem:[#allocation30_spill]] }
 0x2ad   : > { %v465_v9 = vadd.f32 %v463_v5, %v449_v4  ;;  %v472_v10 = vrot.slane %v468_v6, 1  ;;  %v1988_v11 = vpop.permute.xlu1 %488  ;;  %v1990_v2 = vpop.permute.xlu0 %513  ;;  %v502_v63 = vstv %s1974_s26  ;;  %v2066_v29 = vand.u32 15, %v1917_v35  ;;  %s2072_s26 = sld [smem:[#allocation6 + $0x2a]] }
 0x2ae   : > { %v466_v14 = vadd.f32 %v464_v7, %v450_v8  ;;  %v524_v33 = vstv %s1978_s5  ;;  %v529_v34 = vstv %s1980_s11  ;;  %v2070_v22 = vand.u32 15, %v312_v23  ;;  %s2651_s5 = sld [smem:[#allocation28_spill]]  ;;  %s2652_s11 = sld [smem:[#allocation29_spill]] }
 0x2af   : > { %v2001_v16 = vadd.f32 %v472_v10, %v465_v9  ;;  %v494_v1 = vsel %vm492_vm7, %v1849_v37, %v1955_v12  ;;  %v645_v4 = vstv %s1984_s20  ;;  %vm337_vm13 = vcmp.ge.s32.totalorder %v2066_v29, 2  ;;  %s2662_s20 = sld [smem:[#allocation31_spill]] }
 0x2b0   : > { %v2007_v17 = vadd.f32 %v473_v13, %v466_v14  ;;  %v503_v20 = vmul.f32 %v502_v63, %v494_v1  ;;  %v493_v28 = vsel %vm492_vm7, %v1955_v12, %v1988_v11  ;;  %v521_v13 = vsel %vm519_vm8, %v1857_v39, %v1990_v2 }
 0x2b1   : > { %v2013_v31 = vpop.permute.xlu1 %629  ;;  %v2015_v18 = vpop.permute.xlu0 %765  ;;  %v504_v10 = vmul.f32 %v502_v63, %v493_v28  ;;  %v498_v14 = vmul.f32 %v497_v32, %v494_v1  ;;  %v530_v15 = vmul.f32 %v529_v34, %v521_v13  ;;  %vm707_vm5 = vcmp.lt.s32.totalorder %v1917_v35, 112 }
 0x2b2   : > { %v637_v5 = vsel %vm635_vm9, %v1847_v36, %v2013_v31  ;;  %v507_v23 = vrot.slane %v503_v20, 1  ;;  %v525_v36 = vmul.f32 %v524_v33, %v521_v13  ;;  %v636_v63 = vsel %vm635_vm9, %v2013_v31, %v1970_v0 }
 0x2b3   : > { %v646_v1 = vmul.f32 %v645_v4, %v637_v5  ;;  %v508_v13 = vrot.slane %v504_v10, 1  ;;  %v647_v3 = vmul.f32 %v645_v4, %v636_v63  ;;  %v499_v10 = vmul.f32 %v497_v32, %v493_v28 }
 0x2b4   : > { %v511_v7 = vadd.f32 %v507_v23, %v498_v14  ;;  %v534_v11 = vrot.slane %v530_v15, 1  ;;  %v2202_v28 = vsel %vm337_vm13, %v2001_v16, 0.0  ;;  %v2659_v49 = vstv %s2652_s11 }
 0x2b5   : > { %v2042_v24 = vpop.permute.xlu1 %515  ;;  %v2044_v25 = vpop.permute.xlu0 %906  ;;  %vm993_vm6 = vcmp.lt.s32.totalorder %v1917_v35, 110  ;;  %vm850_vm7 = vcmp.lt.s32.totalorder %v1917_v35, 111  ;;  %vm877_vm9 = vcmp.lt.s32.totalorder %v1917_v35, 95  ;;  %vm1020_vm13 = vcmp.lt.s32.totalorder %v1917_v35, 94 }
 0x2b6   : > { %v520_v0 = vsel %vm519_vm8, %v1990_v2, %v2042_v24  ;;  %v914_v8 = vsel %vm912_vm10, %v1869_v41, %v2044_v25  ;;  %v527_v23 = vadd.f32 %v525_v36, %v511_v7  ;;  %v650_v2 = vrot.slane %v646_v1, 1 }
 0x2b7   : > { %v526_v31 = vmul.f32 %v524_v33, %v520_v0  ;;  %v531_v41 = vmul.f32 %v529_v34, %v520_v0  ;;  %v512_v33 = vadd.f32 %v508_v13, %v499_v10  ;;  %v2644_v7 = vstv %s2643_s22  ;;  %s2664_s22 = sld [smem:[#allocation32_spill]] }
 0x2b8   : > { %v641_v15 = vmul.f32 %v2644_v7, %v637_v5  ;;  %v2645_v34 = vstv %s1992_s6  ;;  %v2646_v1 = vmov %v2644_v7  ;;  %v651_v0 = vrot.slane %v647_v3, 1 }
 0x2b9   : > { %v2092_v37 = vpop.permute.xlu1 %763  ;;  %v2094_v9 = vpop.permute.xlu0 %658  ;;  %v923_v36 = vmul.f32 %v2645_v34, %v914_v8  ;;  %v2647_v5 = vstv %s1996_s4  ;;  %v2648_v10 = vstv %s2005_s17  ;;  %v528_v12 = vadd.f32 %v526_v31, %v512_v33 }
 0x2ba   : > { %v771_v14 = vsel %vm769_vm11, %v1855_v38, %v2092_v37  ;;  %v642_v38 = vmul.f32 %v2646_v1, %v636_v63  ;;  %v2649_v63 = vstv %s2009_s19  ;;  %v654_v6 = vadd.f32 %v650_v2, %v641_v15 }
 0x2bb   : > { %v780_v13 = vmul.f32 %v2647_v5, %v771_v14  ;;  %v535_v53 = vrot.slane %v531_v41, 1  ;;  %v2657_v41 = vstv %s2650_s30  ;;  %v775_v47 = vmul.f32 %v2659_v49, %v771_v14 }
 0x2bc   : > { %vm483_vm8 = vcmp.ge.s32.totalorder %v2070_v22, 1 }
 0x2bd   : > { %v2127_v30 = vpop.permute.xlu1 %908  ;;  %v2129_v60 = vpop.permute.xlu0 %540 }
 0x2be   : > { %v548_v31 = vsel %vm546_vm14, %v1877_v43, %v2129_v60 }
 0x2c1   : > { %v657_v20 = vpop.permute.xlu1 %656  ;;  %v2163_v39 = vpop.permute.xlu0 %792 }
 0x2c2   : > { %v664_v32 = vsel %vm662_vm12, %v1867_v40, %v657_v20  ;;  %v2215_v40 = vsel %vm769_vm11, %v2092_v37, %v2015_v18  ;;  %v663_v16 = vsel %vm662_vm12, %v657_v20, %v2094_v9  ;;  %v538_v37 = vadd.f32 %v534_v11, %v527_v23 }
 0x2c3   : > { %v668_v7 = vmul.f32 %v2648_v10, %v664_v32  ;;  %v673_v3 = vmul.f32 %v2649_v63, %v664_v32  ;;  %v927_v9 = vrot.slane %v923_v36, 1  ;;  %v913_v20 = vsel %vm912_vm10, %v2044_v25, %v2127_v30 }
 0x2c4   : > { %v2653_v32 = vmov %v2648_v10  ;;  %v2654_v10 = vmov %v2649_v63  ;;  %v2655_v63 = vstv %s1996_s4  ;;  %v2656_v23 = vstv %s1998_s9 }
 0x2c5   : > { %v543_v24 = vpop.permute.xlu1 %542  ;;  %v2185_v4 = vpop.permute.xlu0 %933  ;;  %v669_v5 = vmul.f32 %v2653_v32, %v663_v16  ;;  %v2242_v11 = vmul.f32 %v2655_v63, %v2215_v40  ;;  %v655_v25 = vadd.f32 %v651_v0, %v642_v38  ;;  %v784_v30 = vrot.slane %v780_v13, 1 }
 0x2c6   : > { %v547_v34 = vsel %vm546_vm14, %v2129_v60, %v543_v24  ;;  %v674_v24 = vmul.f32 %v2654_v10, %v663_v16  ;;  %v670_v15 = vadd.f32 %v668_v7, %v654_v6  ;;  %v677_v36 = vrot.slane %v673_v3, 1 }
 0x2c7   : > { %v553_v2 = vmul.f32 %v2656_v23, %v547_v34  ;;  %v558_v33 = vmul.f32 %v2657_v41, %v547_v34  ;;  %v539_v16 = vadd.f32 %v535_v53, %v528_v12  ;;  %v2658_v10 = vstv %s2651_s5 }
 0x2c8   : > { %v918_v63 = vmul.f32 %v2658_v10, %v914_v8  ;;  %v924_v50 = vmul.f32 %v2660_v52, %v913_v20  ;;  %v2661_v43 = vmov %v2656_v23  ;;  %v671_v23 = vadd.f32 %v669_v5, %v655_v25 }
 0x2c9   : > { %v791_v1 = vpop.permute.xlu1 %790  ;;  %v2229_v18 = vpop.permute.xlu0 %569  ;;  %v552_v60 = vmul.f32 %v2661_v43, %v548_v31  ;;  %v678_v38 = vrot.slane %v674_v24, 1  ;;  %v941_v6 = vsel %vm939_vm15, %v1889_v45, %v2185_v4  ;;  %v785_v53 = vrot.slane %v2242_v11, 1 }
 0x2ca   : > { %v931_v0 = vadd.f32 %v927_v9, %v918_v63  ;;  %v555_v8 = vadd.f32 %v553_v2, %v539_v16  ;;  %v562_v12 = vrot.slane %v558_v33, 1  ;;  %v788_v49 = vadd.f32 %v784_v30, %v775_v47 }
 0x2cb   : > { %v2663_v52 = vmov %v2657_v41  ;;  %v681_v13 = vadd.f32 %v677_v36, %v670_v15  ;;  %v798_v45 = vsel %vm796_vm0, %v1875_v42, %v791_v1  ;;  %v2665_v34 = vstv %s2662_s20 }
 0x2cc   : > { %v557_v14 = vmul.f32 %v2663_v52, %v548_v31  ;;  %v945_v9 = vmul.f32 %v2665_v34, %v941_v6  ;;  %v2666_v5 = vstv %s2017_s1  ;;  %v574_v47 = vsel %vm573_vm1, %v2229_v18, %v1887_v44  ;;  %s2705_s1 = sld [smem:[#allocation33_spill]] }
 0x2cd   : > { %v936_v32 = vpop.permute.xlu1 %935  ;;  %v2252_v51 = vpop.permute.xlu0 %817  ;;  %v950_v24 = vmul.f32 %v2666_v5, %v941_v6  ;;  %v2667_v42 = vmov %v2658_v10  ;;  %v928_v2 = vrot.slane %v924_v50, 1  ;;  %v554_v41 = vadd.f32 %v552_v60, %v538_v37 }
 0x2ce   : > { %v940_v11 = vsel %vm939_vm15, %v2185_v4, %v936_v32  ;;  %v919_v31 = vmul.f32 %v2667_v42, %v913_v20  ;;  %v682_v33 = vadd.f32 %v678_v38, %v671_v23  ;;  %v566_v25 = vadd.f32 %v562_v12, %v555_v8 }
 0x2cf   : > { %v797_v30 = vsel %vm796_vm0, %v791_v1, %v2163_v39  ;;  %v2668_v15 = vstv %s2664_s22  ;;  %v2669_v44 = vstv %s2025_s29  ;;  %v2670_v4 = vstv %s2027_s21 }
 0x2d0   : > { %v802_v36 = vmul.f32 %v2668_v15, %v798_v45  ;;  %v807_v16 = vmul.f32 %v2669_v44, %v798_v45  ;;  %v580_v32 = vmul.f32 %v2670_v4, %v574_v47  ;;  %v2671_v20 = vstv %s2032_s14 }
 0x2d1   : > { %v568_v7 = vpop.permute.xlu1 %567  ;;  %v963_v3 = vpop.permute.xlu0 %962  ;;  %v585_v50 = vmul.f32 %v2671_v20, %v574_v47  ;;  %v2672_v37 = vmov %v2665_v34  ;;  %v2673_v63 = vmov %v2666_v5  ;;  %v561_v38 = vrot.slane %v557_v14, 1 }
 0x2d2   : > { %v946_v10 = vmul.f32 %v2672_v37, %v940_v11  ;;  %v951_v43 = vmul.f32 %v2673_v63, %v940_v11  ;;  %v688_v39 = vadd.f32 %v2050_v27, %v681_v13  ;;  %v947_v1 = vadd.f32 %v945_v9, %v931_v0 }
 0x2d3   : > { %v954_v6 = vrot.slane %v950_v24, 1  ;;  %v2674_v8 = vstv %s2652_s11  ;;  %v932_v52 = vadd.f32 %v928_v2, %v919_v31  ;;  %v689_v45 = vadd.f32 %v2047_v26, %v682_v33 }
 0x2d4   : > { %v776_v12 = vmul.f32 %v2674_v8, %v2215_v40  ;;  %v2675_v34 = vmov %v2668_v15  ;;  %v804_v47 = vadd.f32 %v802_v36, %v788_v49  ;;  %v2676_v42 = vmov %v2669_v44 }
 0x2d5   : > { %v820_v60 = vpop.permute.xlu1 %819  ;;  %v702_v23 = vpop.permute.xlu0 %701  ;;  %v803_v5 = vmul.f32 %v2675_v34, %v797_v30  ;;  %v808_v11 = vmul.f32 %v2676_v42, %v797_v30  ;;  %v811_v15 = vrot.slane %v807_v16, 1  ;;  %v575_v27 = vsel %vm573_vm1, %v568_v7, %v2229_v18 }
 0x2d6   : > { %v582_v0 = vadd.f32 %v580_v32, %v566_v25  ;;  %v589_v14 = vrot.slane %v585_v50, 1  ;;  %v948_v13 = vadd.f32 %v946_v10, %v932_v52  ;;  %v955_v9 = vrot.slane %v951_v43, 1 }
 0x2d7   : > { %v789_v31 = vadd.f32 %v785_v53, %v776_v12  ;;  %v565_v26 = vadd.f32 %v561_v38, %v554_v41  ;;  %v958_v2 = vadd.f32 %v954_v6, %v947_v1  ;;  %v2677_v33 = vrot.slane %v2030_v21, 1 }
 0x2d8   : > { %v2678_v49 = vmov %v2670_v4  ;;  %v2679_v30 = vmov %v2671_v20  ;;  %v967_v18 = vsel %vm966_vm2, %v963_v3, %v1894_v54  ;;  %v812_v53 = vrot.slane %v808_v11, 1 }
 0x2d9   : > { %v961_v40 = vpop.permute.xlu1 %960  ;;  %v597_v24 = vpop.permute.xlu0 %596  ;;  %v699_v44 = vadd.f32 %v2677_v33, %v688_v39  ;;  %v579_v36 = vmul.f32 %v2678_v49, %v575_v27  ;;  %v584_v16 = vmul.f32 %v2679_v30, %v575_v27  ;;  %v805_v21 = vadd.f32 %v803_v5, %v789_v31 }
 0x2da   : > { %v601_v7 = vsel %vm600_vm3, %v597_v24, %v1902_v56  ;;  %v815_v41 = vadd.f32 %v811_v15, %v804_v47  ;;  %v2680_v25 = vrot.slane %v2022_v19, 1  ;;  %v593_v54 = vadd.f32 %v589_v14, %v582_v0 }
 0x2db   : > { %v959_v32 = vadd.f32 %v955_v9, %v948_v13  ;;  %v824_v56 = vsel %vm823_vm4, %v820_v60, %v1896_v55  ;;  %v825_v20 = vsel %vm823_vm4, %v2252_v51, %v820_v60  ;;  %v2681_v10 = vstv %s2034_s13 }
 0x2dc   : > { %v700_v4 = vadd.f32 %v2680_v25, %v689_v45  ;;  %v973_v19 = vmul.f32 %v2681_v10, %v967_v18  ;;  %v968_v63 = vsel %vm966_vm2, %v961_v40, %v963_v3  ;;  %v2682_v43 = vstv %s2054_s25 }
 0x2dd   : > { %v704_v50 = vpop.permute.xlu1 %703  ;;  %v845_v37 = vpop.permute.xlu0 %844  ;;  %v607_v38 = vmul.f32 %v2682_v43, %v601_v7  ;;  %v2683_v39 = vstv %s2060_s12  ;;  %v581_v6 = vadd.f32 %v579_v36, %v565_v26  ;;  %v588_v55 = vrot.slane %v584_v16, 1 }
 0x2de   : > { %v612_v1 = vmul.f32 %v2683_v39, %v601_v7  ;;  %v2684_v8 = vstv %s2037_s18  ;;  %v709_v51 = vsel %vm707_vm5, %v702_v23, %v704_v50  ;;  %v2685_v60 = vstv %s2039_s15  ;;  %s2724_s18 = sld [smem:[#allocation37_spill]] }
 0x2df   : > { %v978_v12 = vmul.f32 %v2684_v8, %v967_v18  ;;  %v829_v52 = vmul.f32 %v2685_v60, %v825_v20  ;;  %v2686_v45 = vmov %v2685_v60  ;;  %v2687_v5 = vstv %s2052_s23 }
 0x2e0   : > { %v830_v34 = vmul.f32 %v2686_v45, %v824_v56  ;;  %v834_v47 = vmul.f32 %v2687_v5, %v825_v20  ;;  %v708_v3 = vsel %vm707_vm5, %v704_v50, %v1904_v57  ;;  %v816_v42 = vadd.f32 %v812_v53, %v805_v21 }
 0x2e1   : > { %v2688_v11 = vmov %v2687_v5  ;;  %v2689_v27 = vmov %v2681_v10  ;;  %v2690_v0 = vmov %v2684_v8  ;;  %v595_v13 = vpop.permute.xlu1 %594  ;;  %v990_v9 = vpop.permute.xlu0 %989  ;;  %v975_v40 = vadd.f32 %v973_v19, %v959_v32 }
 0x2e2   : > { %v835_v15 = vmul.f32 %v2688_v11, %v824_v56  ;;  %v972_v23 = vmul.f32 %v2689_v27, %v968_v63  ;;  %v977_v14 = vmul.f32 %v2690_v0, %v968_v63  ;;  %v609_v31 = vadd.f32 %v607_v38, %v593_v54 }
 0x2e3   : > { %v616_v26 = vrot.slane %v612_v1, 1  ;;  %v2691_v33 = vstv %s2062_s8  ;;  %v982_v36 = vrot.slane %v978_v12, 1  ;;  %v2693_v57 = vstv %s2072_s26  ;;  %s1484_s8 = smov [#allocation7]  }
 0x2e4   : > { %v713_v49 = vmul.f32 %v2691_v33, %v709_v51  ;;  %v2692_v30 = vmov %v2691_v33  ;;  %v718_v18 = vmul.f32 %v2693_v57, %v709_v51  ;;  %v2694_v7 = vmov %v2693_v57 }
 0x2e5   : > { %v714_v16 = vmul.f32 %v2692_v30, %v708_v3  ;;  %v719_v21 = vmul.f32 %v2694_v7, %v708_v3  ;;  %vm734_vm10 = vcmp.lt.s32.totalorder %v1917_v35, 96  ;;  %v592_v53 = vadd.f32 %v588_v55, %v581_v6  ;;  %v847_v19 = vpop.permute.xlu1 %846  ;;  %v729_v63 = vpop.permute.xlu0 %728 }
 0x2e6   : > { %v831_v25 = vadd.f32 %v829_v52, %v815_v41  ;;  %v832_v56 = vadd.f32 %v830_v34, %v816_v42  ;;  %v838_v20 = vrot.slane %v834_v47, 1  ;;  %v839_v54 = vrot.slane %v835_v15, 1 }
 0x2e7   : > { %v974_v32 = vadd.f32 %v972_v23, %v958_v2  ;;  %v981_v50 = vrot.slane %v977_v14, 1  ;;  %v602_v10 = vsel %vm600_vm3, %v595_v13, %v597_v24  ;;  %v620_v43 = vadd.f32 %v616_v26, %v609_v31 }
 0x2e8   : > { %v715_v38 = vadd.f32 %v713_v49, %v699_v44  ;;  %v994_v41 = vsel %vm993_vm6, %v990_v9, %v1906_v58  ;;  %v851_v39 = vsel %vm850_vm7, %v847_v19, %v1908_v59  ;;  %v716_v2 = vadd.f32 %v714_v16, %v700_v4 }
 0x2e9   : > { %v722_v1 = vrot.slane %v718_v18, 1  ;;  %v723_v6 = vrot.slane %v719_v21, 1  ;;  %v852_v24 = vsel %vm850_vm7, %v845_v37, %v847_v19  ;;  %vm338_vm11 = vcmp.ge.s32.totalorder %v2070_v22, 2  ;;  %v988_v47 = vpop.permute.xlu1 %987  ;;  %v874_v3 = vpop.permute.xlu0 %873 }
 0x2ea   : > { %v2695_v55 = vstv %s2054_s25  ;;  %v2696_v8 = vstv %s2060_s12  ;;  %v2697_v51 = vstv %s2085_s27  ;;  %v2698_v60 = vstv %s2096_s16 }
 0x2eb   : > { %v606_v44 = vmul.f32 %v2695_v55, %v602_v10  ;;  %v611_v12 = vmul.f32 %v2696_v8, %v602_v10  ;;  %v857_v58 = vmul.f32 %v2697_v51, %v851_v39  ;;  %v862_v52 = vmul.f32 %v2698_v60, %v851_v39 }
 0x2ec   : > { %v986_v59 = vadd.f32 %v982_v36, %v975_v40  ;;  %v842_v4 = vadd.f32 %v838_v20, %v831_v25  ;;  %v843_v45 = vadd.f32 %v839_v54, %v832_v56  ;;  %v2699_v34 = vstv %s2074_s24  ;;  %s2727_s24 = sld [smem:[#allocation18_spill]] }
 0x2ed   : > { %v1000_v5 = vmul.f32 %v2699_v34, %v994_v41  ;;  %v985_v37 = vadd.f32 %v981_v50, %v974_v32  ;;  %vm482_vm12 = vcmp.ge.s32.totalorder %v2066_v29, 1  ;;  %v2700_v42 = vstv %s2083_s3  ;;  %v731_v21 = vpop.permute.xlu1 %730 }
 0x2ee   : > { %v1005_v11 = vmul.f32 %v2700_v42, %v994_v41  ;;  %v2701_v15 = vmov %v2697_v51  ;;  %v995_v23 = vsel %vm993_vm6, %v988_v47, %v990_v9  ;;  %v622_v0 = vsel %vm483_vm8, %v620_v43, 0.0 }
 0x2ef   : > { %v856_v27 = vmul.f32 %v2701_v15, %v852_v24  ;;  %v726_v14 = vadd.f32 %v722_v1, %v715_v38  ;;  %v727_v13 = vadd.f32 %v723_v6, %v716_v2  ;;  %v2702_v40 = vmov %v2698_v60 }
 0x2f0   : > { %v861_v31 = vmul.f32 %v2702_v40, %v852_v24  ;;  %v608_v26 = vadd.f32 %v606_v44, %v592_v53  ;;  %v615_v33 = vrot.slane %v611_v12, 1  ;;  %v859_v49 = vadd.f32 %v857_v58, %v843_v45 }
 0x2f1   : > { %v866_v36 = vrot.slane %v862_v52, 1  ;;  %v1002_v30 = vadd.f32 %v1000_v5, %v986_v59  ;;  %v2703_v16 = vmov %v2699_v34  ;;  %v2704_v57 = vmov %v2700_v42  ;;  %v872_v12 = vpop.permute.xlu1 %871 }
 0x2f2   : > { %v999_v9 = vmul.f32 %v2703_v16, %v995_v23  ;;  %v1004_v18 = vmul.f32 %v2704_v57, %v995_v23  ;;  %v878_v7 = vsel %vm877_vm9, %v874_v3, %v1912_v61  ;;  %v1009_v25 = vrot.slane %v1005_v11, 1  ;;  %v1015_v61 = vpop.permute.xlu0 %1014  ;;  %p2730_p12 = scmp.ne.s32.totalorder %s2727_s24, 0 }
 0x2f3   : > { %v858_v53 = vadd.f32 %v856_v27, %v842_v4  ;;  %v735_v56 = vsel %vm734_vm10, %v731_v21, %v1914_v62  ;;  %v736_v20 = vsel %vm734_vm10, %v729_v63, %v731_v21  ;;  %vm759_vm14 = vcmp.lt.s32.totalorder %v2066_v29, 15 }
 0x2f4   : > { %v865_v54 = vrot.slane %v861_v31, 1  ;;  %v2706_v32 = vstv %s2106_s7  ;;  %v2708_v43 = vstv %s2113_s10  ;;  %v870_v41 = vadd.f32 %v866_v36, %v859_v49 }
 0x2f5   : > { %v740_v50 = vmul.f32 %v2706_v32, %v736_v20  ;;  %v2707_v10 = vmov %v2706_v32  ;;  %v745_v38 = vmul.f32 %v2708_v43, %v736_v20  ;;  %v2709_v39 = vstv %s2098_s28  ;;  %s1387_s28 = sshll.u32 %s1484_s8, 4  ;;  %s1388_s28 = int_to_ptr.vmem [resolvable:$false] %s1387_s28 }
 0x2f6   : > { %v741_v19 = vmul.f32 %v2707_v10, %v735_v56  ;;  %v884_v2 = vmul.f32 %v2709_v39, %v878_v7  ;;  %v2710_v1 = vstv %s2705_s1  ;;  %v2711_v6 = vmov %v2708_v43  ;;  %s1389_s6 = scalar_lea.vmem %s1388_s28, 2048 }
 0x2f7   : > { %v889_v62 = vmul.f32 %v2710_v1, %v878_v7  ;;  %v746_v24 = vmul.f32 %v2711_v6, %v735_v56  ;;  %v619_v63 = vadd.f32 %v615_v33, %v608_v26  ;;  %v1001_v55 = vadd.f32 %v999_v9, %v985_v37  ;;  %v1019_v37 = vpop.permute.xlu0 %1018 }
 0x2f8   : > { %v1008_v44 = vrot.slane %v1004_v18, 1  ;;  %vm760_vm15 = vcmp.lt.s32.totalorder %v2070_v22, 15  ;;  %v743_v8 = vadd.f32 %v741_v19, %v727_v13  ;;  %v742_v51 = vadd.f32 %v740_v50, %v726_v14  ;;  %v1017_v13 = vpop.permute.xlu1 %1016 }
 0x2f9   : > { %v749_v58 = vrot.slane %v745_v38, 1  ;;  %v750_v60 = vrot.slane %v746_v24, 1  ;;  %v879_v52 = vsel %vm877_vm9, %v872_v12, %v874_v3  ;;  %v479_v59 = vsel %vm338_vm11, %v2007_v17, 0.0 }
 0x2fa   : > { %v869_v4 = vadd.f32 %v865_v54, %v858_v53  ;;  %v2712_v45 = vmov %v2709_v39  ;;  %v2713_v5 = vmov %v2710_v1  ;;  %v624_v42 = vadd.f32 %v622_v0, %v479_v59  ;;  %v2722_v59 = vld [vmem:[#allocation23_spill] sm:$0xff] }
 0x2fb   : > { %v883_v34 = vmul.f32 %v2712_v45, %v879_v52  ;;  %v888_v47 = vmul.f32 %v2713_v5, %v879_v52  ;;  %v886_v11 = vadd.f32 %v884_v2, %v870_v41  ;;  %v893_v15 = vrot.slane %v889_v62, 1  ;;  %v2723_v45 = vld [vmem:[#allocation25_spill] sm:$0xff] }
 0x2fc   : > { %v754_v27 = vadd.f32 %v750_v60, %v743_v8  ;;  %v621_v3 = vsel %vm482_vm12, %v619_v63, 0.0  ;;  %v1013_v23 = vadd.f32 %v1009_v25, %v1002_v30  ;;  %v1012_v40 = vadd.f32 %v1008_v44, %v1001_v55  ;;  %v2725_v5 = vld [vmem:[#allocation21_spill] sm:$0xff] }
 0x2fd   : > { %v885_v14 = vadd.f32 %v883_v34, %v869_v4  ;;  %v892_v17 = vrot.slane %v888_v47, 1  ;;  %v753_v31 = vadd.f32 %v749_v58, %v742_v51  ;;  %v1022_v26 = vsel %vm1020_vm13, %v1015_v61, %v1017_v13 }
 0x2fe   : > { %v1021_v0 = vsel %vm1020_vm13, %v1017_v13, %v1019_v37  ;;  %v2714_v49 = vstv %s2123_s0  ;;  %v2715_v16 = vstv %s2125_s2  ;;  %v623_v30 = vadd.f32 %v621_v3, %v2202_v28  ;;  %s2718_s0 = sld [smem:[#allocation15_spill]]  ;;  %s2719_s2 = sld [smem:[#allocation20_spill]]  ;;  %v2726_v37 = vld [vmem:[#allocation22_spill] sm:$0xff] }
 0x2ff   : > { %v896_v33 = vadd.f32 %v892_v17, %v885_v14  ;;  %v1026_v36 = vmul.f32 %v2714_v49, %v1022_v26  ;;  %v1031_v9 = vmul.f32 %v2715_v16, %v1022_v26  ;;  %v2716_v57 = vmov %v2714_v49 }
 0x300   : > { %v1027_v18 = vmul.f32 %v2716_v57, %v1021_v0  ;;  %v897_v7 = vadd.f32 %v893_v15, %v886_v11  ;;  %v758_v21 = vadd.f32 %v754_v27, %v624_v42  ;;  %v2717_v25 = vmov %v2715_v16  ;;  %v2728_v11 = vld [vmem:[#allocation24_spill] sm:$0xff] }
 0x301   : > { %v1032_v53 = vmul.f32 %v2717_v25, %v1021_v0  ;;  %v898_v56 = vsel %vm759_vm14, %v896_v33, 0.0  ;;  %v1028_v20 = vadd.f32 %v1026_v36, %v1012_v40  ;;  %v1035_v54 = vrot.slane %v1031_v9, 1 }
 0x302   : > { %v1029_v35 = vadd.f32 %v1027_v18, %v1013_v23  ;;  %v757_v32 = vadd.f32 %v753_v31, %v623_v30  ;;  %vm902_vm0 = vcmp.lt.s32.totalorder %v2066_v29, 14  ;;  %vm903_vm1 = vcmp.lt.s32.totalorder %v2070_v22, 14 }
 0x303   : > { %v1036_v50 = vrot.slane %v1032_v53, 1  ;;  %v1039_v10 = vadd.f32 %v1035_v54, %v1028_v20  ;;  %v899_v28 = vsel %vm760_vm15, %v897_v7, 0.0  ;;  %v2720_v29 = vlaneseq }
 0x304   : > { %v900_v19 = vadd.f32 %v898_v56, %v757_v32  ;;  %v901_v38 = vadd.f32 %v899_v28, %v758_v21  ;;  %s1242_s3 = sshll.u32 %s2718_s0, 10  ;;  %s2721_s12 = sshll.u32 %s2719_s2, 6 }
 0x305   : > { %v1040_v43 = vadd.f32 %v1036_v50, %v1029_v35  ;;  %v1041_v61 = vsel %vm902_vm0, %v1039_v10, 0.0  ;;  %v1054_v6 = vshrl.u32 %v2720_v29, 7  ;;  %s202_s13 = scalar_lea.vmem [#allocation7], %s2721_s12  ;;  %s2476_s21 = scalar_lea.hbm %s2724_s18, %s1242_s3 }
 0x306   : > { %v1043_v41 = vadd.f32 %v1041_v61, %v900_v19  ;;  %s1091_s14 = sshll.u32 %s202_s13, 4  ;;  %s1078_s25 = scalar_lea.sflag [#allocation4], %s2719_s2  ;;  %s2482_s14 = int_to_ptr.vmem [resolvable:$true] %s1091_s14 }
 0x307   : > { %v1042_v39 = vsel %vm903_vm1, %v1040_v43, 0.0  ;;  %v1055_v55 = vsub.s32 0, %v1054_v6  ;;  %s1383_s27 = scalar_lea.vmem %s2482_s14, 1024  ;;  %p1390_p10 = scmp.lt.s32.totalorder %s2482_s14, %s1388_s28 }
 0x308   : > { %v1044_v2 = vadd.f32 %v1042_v39, %v901_v38  ;;  %v1045_v1 = vmul.f32 0.5, %v1043_v41  ;;  %p1384_p5 = scmp.ne.s32.totalorder %s2482_s14, %s1383_s27  ;;  %p1391_p1 = scmp.lt.s32.totalorder %s1389_s6, %s1383_s27 }
 0x30a   : > { %v1046_v62 = vmul.f32 0.5, %v1044_v2  ;;  %1334 = vtanh.f32 %v1045_v1  ;;  %p1385_p8 = pnand %p1384_p5, %p2730_p12  ;;  %p1392_p4 = por %p1391_p1, %p1390_p10 }
 0x30c   : > { %1336 = vtanh.f32 %v1046_v62  ;;  %p1386_p9 = pneg %p1385_p8 }
 0x30e   : > { %p1393_p11 = pnand %p1392_p4, %p1386_p9 }
 0x314   : > { %v1335_v24 = vpop.eup %1334 }
 0x315   : > { %v1049_v22 = vmul.f32 0.5, %v1335_v24 }
 0x316   : > { %v1337_v63 = vpop.eup %1336 }
 0x317   : > { %v1050_v44 = vmul.f32 0.5, %v1337_v63  ;;  %v1051_v8 = vadd.f32 0.5, %v1049_v22 }
 0x319   : > { %v1052_v12 = vadd.f32 0.5, %v1050_v44  ;;  %v1056_v51 = vrot.slane %v1051_v8, %v1055_v55 }
 0x31b   : > { %v1060_v58 = vrot.slane %v1052_v12, %v1055_v55  ;;  %v1061_v60 = vmul.f32 %v1056_v51, %v1730_v46  ;;  %v1063_v52 = vmul.f32 %v1056_v51, %v1736_v48  ;;  %v1065_v4 = vmul.f32 %v1056_v51, %v2722_v59  ;;  %v2729_v46 = vld [vmem:[#allocation26_spill] sm:$0xff] }
 0x31c   : > { %v1067_v34 = vmul.f32 %v1056_v51, %v2723_v45 }
 0x31d   : > { %v1062_v47 = vmul.f32 %v1060_v58, %v2725_v5  ;;  %v1064_v42 = vmul.f32 %v1060_v58, %v2726_v37  ;;  %v1066_v15 = vmul.f32 %v1060_v58, %v2728_v11  ;;  %v1068_v27 = vmul.f32 %v1060_v58, %v2729_v46  ;;  %1069 = vst [vmem:[%s202_s13] sm:$0xff] %v1061_v60 }
 0x31e   : > { %1071 = vst [vmem:[%s202_s13 + $0x10] sm:$0xff] %v1063_v52  ;;  %1073 = vst [vmem:[%s202_s13 + $0x20] sm:$0xff] %v1065_v4 }
 0x31f   : > { %1075 = vst [vmem:[%s202_s13 + $0x30] sm:$0xff] %v1067_v34  ;;  %1070 = vst [vmem:[%s202_s13 + $0x8] sm:$0xff] %v1062_v47 }
 0x320   : > { %1072 = vst [vmem:[%s202_s13 + $0x18] sm:$0xff] %v1064_v42  ;;  %1074 = vst [vmem:[%s202_s13 + $0x28] sm:$0xff] %v1066_v15 }
 0x321   : > { %1076 = vst [vmem:[%s202_s13 + $0x38] sm:$0xff] %v1068_v27 }
 0x322   : > { %1396 = shalt.err (!%p1393_p11)
}
 0x323   : > { %s1397_s7 = scalar_lea.hbm %s2476_s21, 1024  ;;  %s1401_s10 = scalar_lea.hbm %s2724_s18, 2048 }
 0x324   : > { %p1398_p0 = scmp.ne.s32.totalorder %s2476_s21, %s1397_s7  ;;  %p1402_p6 = scmp.lt.u32.totalorder %s2476_s21, %s2724_s18 }
 0x325   : > { %p1403_p3 = scmp.lt.u32.totalorder %s1401_s10, %s1397_s7  ;;  %p1405_p5 = scmp.lt.u32.totalorder %s1397_s7, %s2476_s21 }
 0x326   : > { %p1399_p2 = pnand %p1398_p0, %p2730_p12 }
 0x327   : > { %p1404_p13 = por %p1403_p3, %p1402_p6 }
 0x328   : > { %p1400_p7 = pneg %p1399_p2 }
 0x329   : > { %p1406_p8 = por %p1405_p5, %p1404_p13 }
 0x32b   : > { %p1407_p9 = pnand %p1406_p8, %p1400_p7 }
 0x32d   : > { %1410 = shalt.err (!%p1407_p9)
}
 0x32e   : > { %s1485_s29 = smov 256   ;;  %s2731_s23 = smov 16  }
 0x32f   : > { %1253 = dma.vmem_to_hbm [thread:$0]  (%p2730_p12), %s2482_s14, 1024, %s2476_s21, %s1078_s25, %s1485_s29, %s1485_s29, %s2731_s23  }
 0x330 PF: > { %s2732_s26 = sld [smem:[#allocation11_spill]]  ;;  %s2733_s30 = sld [smem:[#allocation19_spill]] }
 0x331   : > { %s2734_s5 = sld [smem:[#allocation14_spill]] }
 0x336   : > { %s1106_s11 = sand.u32 1, %s2732_s26   ;;  %p2735_p10 = scmp.ne.s32.totalorder %s2733_s30, 0 }
 0x337   : > { %p2736_p1 = scmp.ge.s32.totalorder %s2734_s5, 2  ;;  %s1107_s20 = scalar_lea.sflag [#allocation4], %s1106_s11 }
 0x339   : > { %p1264_p4 = pnand %p2736_p1, %p2735_p10 }
 0x33b   : > { %1436 = dma.done.wait (!%p1264_p4), %s1107_s20, 1024  }
 0x33c   : > { %1438 = vsyncadd (!%p1264_p4), %s1107_s20, 4294966272  ;;  %s2737_s15 = sld [smem:[#allocation16_spill]]  ;;  %s2738_s12 = sld [smem:[#allocation12_spill]] }
 0x33d   : > { %s2739_s13 = sld [smem:[#allocation13_spill]]  ;;  %s2740_s14 = sld [smem:[#allocation17_spill]] }
 0x342   : > { %p17_p11 = scmp.ge.s32.totalorder %s2737_s15, 4  }
 0x344   :  { %19 = sbr.rel (!%p17_p11) target bundleno = 11 (0xb), region = 82 }
 0x34b   :  { %1112 = vsyncpa [#allocation3], 1 }
 0x34c   :  { %1114 = vsyncpa [#allocation3 + $0x1], 1 }
 0x34d   :  { %1115 = vsyncpa [#allocation4], 1 }
 0x34e   :  { %1117 = vsyncpa [#allocation4 + $0x1], 1 }
 0x34f   :  { %1118 = vsyncpa [#allocation5], 1 }
 0x350   :  { %1120 = vsyncpa [#allocation5 + $0x1], 1 }

</bundles_post_ra>
